<compile_context>
chip_gen: v6e
topology: v6e:2x2x1
jax: 0.10.0
libtpu: 0.0.40
codegen_flags: <defaults>
</compile_context>

<pallas_src>
import jax
import jax.numpy as jnp
from jax.experimental import pallas as pl
from jax.experimental.pallas import tpu as pltpu

VMEM_SPEC = pl.BlockSpec(memory_space=pltpu.MemorySpace.VMEM)

LANE = 128
SUBL = 16          # bf16 packs 2 rows / sublane -> keep row tiles % 16 == 0
MAX_TM = 1024      # upper bound for A_hat row tile
MAX_TK = 2048      # upper bound for reduction (node) tile


def _round_up(v, m):
    return ((v + m - 1) // m) * m


def _tpu_vmem_bytes():
    """Physical per-core VMEM; conservative 64 MiB (v7x) fallback if unknown."""
    try:
        info = pltpu.get_tpu_info()
        cap = int(getattr(info, "vmem_capacity_bytes", 0) or 0)
        if cap > 0:
            return cap
    except Exception:
        pass
    return 64 * 1024 * 1024


def _derive_gcn_tiles(N, Cp, budget_bytes):
    """Pick (tm, tk) for the fused GCN kernel.

    Biggest tiles that keep the double-buffered working set under
    `budget_bytes`; tm is a multiple of 16 (bf16 sublanes), tk a multiple of
    128 (lanes). Once the problem is large enough, tm is capped at ~N/2 so the
    "parallel" row axis has >= 2 tiles for v7x's two TensorCores (harmless on
    single-TC v5e/v6e).
    """
    tm_full = _round_up(max(N, 1), SUBL)
    tk_full = _round_up(max(N, 1), LANE)

    tm_cap = _round_up(-(-N // 2), SUBL) if tm_full >= 256 else tm_full
    tm = min(MAX_TM, tm_cap)
    tk = min(MAX_TK, tk_full)

    def ws(tm_, tk_):
        a = tm_ * tk_ * 2           # A_hat tile (bf16)
        xt = tk_ * Cp * 2           # x tile (bf16)
        out = tm_ * Cp * 4          # output tile (f32)
        acc = tm_ * Cp * 4          # accumulator scratch (f32)
        const = 2 * Cp * Cp * 2 + Cp * 4   # W_gcn, W_lin^T (bf16), b_lin (f32)
        return 2 * (a + xt + out) + acc + const   # double-buffered streams

    while ws(tm, tk) > budget_bytes:
        if tk > LANE and (tk >= tm or tm <= SUBL):
            tk = max(LANE, _round_up(tk // 2, LANE))
        elif tm > SUBL:
            tm = max(SUBL, _round_up(tm // 2, SUBL))
        else:
            break
    return tm, tk


# ----------------------------- Pallas kernels ------------------------------ #

def _score_kernel(x_ref, p_ref, s_ref):
    # s[0, n] = tanh(x[n, :] . p_hat); p_hat = p/||p|| folded in by the wrapper.
    # f32 operands so near-tie top-k selection matches the f32 reference.
    raw = jax.lax.dot_general(
        p_ref[...], x_ref[...],
        dimension_numbers=(((1,), (1,)), ((), ())),
        preferred_element_type=jnp.float32)
    s_ref[...] = jnp.tanh(raw)


def _gru_step_kernel(x_ref, s_ref, h0_ref, wih_ref, whh_ref, bih_ref, bhh_ref,
                     h_ref):
    # Single GRU step over batch = Cp rows (PyTorch gate order: r, z, n).
    # Gate blocks are lane-aligned (each padded to Cp), so slices are free.
    # Weights are bf16; dots accumulate in f32.
    Cp = h0_ref.shape[1]
    x = (x_ref[...] * s_ref[...]).astype(wih_ref.dtype)   # x[perm] * score[perm]
    h0 = h0_ref[...]
    gi = jnp.dot(x, wih_ref[...], preferred_element_type=jnp.float32) + bih_ref[...]
    gh = jnp.dot(h0, whh_ref[...], preferred_element_type=jnp.float32) + bhh_ref[...]
    i_r, i_z, i_n = gi[:, :Cp], gi[:, Cp:2 * Cp], gi[:, 2 * Cp:]
    h_r, h_z, h_n = gh[:, :Cp], gh[:, Cp:2 * Cp], gh[:, 2 * Cp:]
    r = jax.nn.sigmoid(i_r + h_r)
    z = jax.nn.sigmoid(i_z + h_z)
    n = jnp.tanh(i_n + r * h_n)
    # NOTE: padded rows [C:Cp] of the evolved W become nonzero (bias driven);
    # that is inert downstream only because x's padded columns are zero.
    h_ref[...] = (1.0 - z) * n + z * h0.astype(jnp.float32)


def _gcn_relu_linear_kernel(a_ref, x_ref, wg_ref, wlin_ref, blin_ref,
                            o_ref, acc_ref):
    # acc = A_hat @ x (f32 accumulator over the node/reduction axis);
    # finalize: out = relu(acc @ W_gcn) @ W_lin^T + b_lin.
    @pl.when(pl.program_id(1) == 0)
    def _():
        acc_ref[...] = jnp.zeros_like(acc_ref)

    acc_ref[...] += jnp.dot(a_ref[...], x_ref[...],
                            preferred_element_type=jnp.float32)

    @pl.when(pl.program_id(1) == pl.num_programs(1) - 1)
    def _():
        ax = acc_ref[...].astype(wg_ref.dtype)
        h = jnp.dot(ax, wg_ref[...], preferred_element_type=jnp.float32)
        h = jnp.maximum(h, 0.0).astype(wlin_ref.dtype)
        o_ref[...] = (jnp.dot(h, wlin_ref[...],
                              preferred_element_type=jnp.float32)
                      + blin_ref[...])


# ------------------------------ JAX glue ----------------------------------- #

def gcn_norm_dense_padded(edge_index, num_nodes, n_rows, n_cols):
    # Dense PyG gcn_norm (add_remaining_self_loops, edge_weight=1), built
    # directly at the padded (n_rows, n_cols) shape, directly in bf16 (no
    # separate f32->bf16 cast over N^2 bytes). Existing unit-weight self loops
    # are zeroed out before exactly one loop per node is added, matching
    # add_remaining_self_loops.
    # TODO(synk): for large sparse graphs keep CSR + scalar-prefetched DMA
    # gathers instead of a dense N x N scatter build.
    row, col = edge_index[0], edge_index[1]
    w_edge = jnp.where(row == col, 0.0, 1.0).astype(jnp.float32)
    loop = jnp.arange(num_nodes, dtype=edge_index.dtype)
    row_all = jnp.concatenate([row, loop])
    col_all = jnp.concatenate([col, loop])
    w = jnp.concatenate([w_edge, jnp.ones(num_nodes, jnp.float32)])
    deg = jnp.zeros(num_nodes, jnp.float32).at[col_all].add(w)
    dis = jnp.where(deg > 0, jax.lax.rsqrt(deg), 0.0)
    norm = dis[row_all] * w * dis[col_all]
    # out[target] += norm * x[source]  =>  A_hat[target, source] = norm
    a = (jnp.zeros((n_rows, n_cols), jnp.bfloat16)
         .at[col_all, row_all].add(norm.astype(jnp.bfloat16)))
    return a


def make_raw_params(key, C):
    # PyTorch-layout parameters of EvolveGCN_H (C = input_dim).
    ks = jax.random.split(key, 8)
    scale = 1.0 / jnp.sqrt(jnp.float32(C))
    return {
        "pool_w": jax.random.normal(ks[0], (1, C), jnp.float32) * scale,   # TopKPooling weight
        "init_w": jax.random.normal(ks[1], (C, C), jnp.float32) * scale,   # EvolveGCNH.initial_weight
        "gru_w_ih": jax.random.normal(ks[2], (3 * C, C), jnp.float32) * scale,
        "gru_w_hh": jax.random.normal(ks[3], (3 * C, C), jnp.float32) * scale,
        "gru_b_ih": jax.random.normal(ks[4], (3 * C,), jnp.float32) * scale,
        "gru_b_hh": jax.random.normal(ks[5], (3 * C,), jnp.float32) * scale,
        "lin_w": jax.random.normal(ks[6], (C, C), jnp.float32) * scale,    # nn.Linear (out, in)
        "lin_b": jax.random.normal(ks[7], (C,), jnp.float32) * scale,
    }


def prepare_params(raw, C):
    """One-time layout prep: lane-pad to Cp=128k, lane-align GRU gates, fold
    1/||p|| into the pooling vector, transpose + bf16-cast matmul weights."""
    Cp = _round_up(C, LANE)

    # TopKPooling projection vector, pre-scaled by 1/||p||, padded to 8
    # sublanes. Kept f32 so top-k selection is not perturbed by bf16 rounding.
    p = raw["pool_w"]
    p = p / jnp.sqrt(jnp.sum(p * p))
    p_pad = jnp.zeros((8, Cp), jnp.float32).at[:1, :C].set(p)

    def pad_gate_w(w):          # w: (3C, C), gates (r, z, n) stacked on rows
        out = jnp.zeros((Cp, 3 * Cp), jnp.float32)
        for g in range(3):
            blk = w[g * C:(g + 1) * C, :].T          # (in, hidden) for gate g
            out = out.at[:C, g * Cp:g * Cp + C].set(blk)
        return out.astype(jnp.bfloat16)

    def pad_gate_b(b):          # b: (3C,)
        out = jnp.zeros((1, 3 * Cp), jnp.float32)
        for g in range(3):
            out = out.at[0, g * Cp:g * Cp + C].set(b[g * C:(g + 1) * C])
        return out

    init_w_pad = (jnp.zeros((Cp, Cp), jnp.float32)
                  .at[:C, :C].set(raw["init_w"]).astype(jnp.bfloat16))
    lin_w_pad = (jnp.zeros((Cp, Cp), jnp.float32)
                 .at[:C, :C].set(raw["lin_w"].T).astype(jnp.bfloat16))
    lin_b_pad = jnp.zeros((1, Cp), jnp.float32).at[0, :C].set(raw["lin_b"])

    return {
        "pool_w": p_pad,                            # (8, Cp)  f32, row 0 real
        "init_w": init_w_pad,                       # (Cp, Cp) bf16
        "gru_wih_t": pad_gate_w(raw["gru_w_ih"]),   # (Cp, 3Cp) bf16
        "gru_whh_t": pad_gate_w(raw["gru_w_hh"]),   # (Cp, 3Cp) bf16
        "gru_bih": pad_gate_b(raw["gru_b_ih"]),     # (1, 3Cp) f32
        "gru_bhh": pad_gate_b(raw["gru_b_hh"]),     # (1, 3Cp) f32
        "lin_w_t": lin_w_pad,                       # (Cp, Cp) bf16
        "lin_b": lin_b_pad,                         # (1, Cp)  f32
    }


def evolve_gcn_h_forward(x, edge_index, params):
    N, C = x.shape
    Cp = params["lin_w_t"].shape[0]            # feature dim padded to lanes
    k = C                                      # TopK ratio = C/N  ->  k = C

    # Generation-aware VMEM budget: ~3/4 of physical VMEM as the scoped limit
    # (v7x 64 MiB -> 48 MiB, v5e/v6e 128 MiB -> 96 MiB), 2/3 of that for the
    # GCN kernel's double-buffered working set.
    vmem_phys = _tpu_vmem_bytes()
    vmem_limit = (3 * vmem_phys) // 4
    tile_budget = (2 * vmem_limit) // 3

    tm, tk = _derive_gcn_tiles(N, Cp, tile_budget)
    Nm = _round_up(N, tm)
    Nk = _round_up(N, tk)
    num_i, num_k = Nm // tm, Nk // tk

    # Padded activations: one f32 copy for the precision-sensitive score path,
    # one bf16 copy for the MXU-heavy GCN path. Zero padding is inert downstream.
    x_f32 = jnp.zeros((Nk, Cp), jnp.float32).at[:N, :C].set(x)
    x_b16 = jnp.zeros((Nk, Cp), jnp.bfloat16).at[:N, :C].set(
        x.astype(jnp.bfloat16))

    # --- TopK scores: tanh(x . p / ||p||), lane-dense (8, Nk) output ---------
    score_rows = pl.pallas_call(
        _score_kernel,
        out_shape=jax.ShapeDtypeStruct((8, Nk), jnp.float32),
        grid=(num_k,),
        in_specs=[pl.BlockSpec((tk, Cp), lambda n: (n, 0)),
                  pl.BlockSpec((8, Cp), lambda n: (0, 0))],
        out_specs=pl.BlockSpec((8, tk), lambda n: (0, n)),
        compiler_params=pltpu.CompilerParams(
            dimension_semantics=("parallel",),
            vmem_limit_bytes=vmem_limit),
    )(x_f32, params["pool_w"])
    score = score_rows[0, :N]

    # TODO(synk): data-dependent top-k selection + row gather stay in plain JAX;
    # a scalar-prefetch (pl.Element) gather inside the GRU call would remove
    # this small intermediate. Gather the tiny (k, C) slab first, then pad.
    top_vals, perm = jax.lax.top_k(score, k)
    x_sel = jnp.zeros((Cp, Cp), jnp.float32).at[:k, :C].set(x[perm])
    s_sel = jnp.zeros((Cp, 1), jnp.float32).at[:k, 0].set(top_vals)

    # --- GRU step: evolve the GCN weight matrix ------------------------------
    w_gcn = pl.pallas_call(
        _gru_step_kernel,
        out_shape=jax.ShapeDtypeStruct((Cp, Cp), jnp.float32),
        in_specs=[VMEM_SPEC] * 7,
        out_specs=VMEM_SPEC,
        compiler_params=pltpu.CompilerParams(vmem_limit_bytes=vmem_limit),
    )(x_sel, s_sel, params["init_w"],
      params["gru_wih_t"], params["gru_whh_t"],
      params["gru_bih"], params["gru_bhh"])

    # --- Dense normalized adjacency (built directly in bf16, padded shape) ---
    a_hat = gcn_norm_dense_padded(edge_index, N, Nm, Nk)

    # --- Fused, tiled GCN aggregation + W_gcn + ReLU + Linear -----------------
    # TODO(synk): optionally hold the whole (Nk, Cp) x slab VMEM-resident on
    # 128 MiB parts (eliminates the per-row-tile x re-stream entirely).
    flops = 2 * Nm * Nk * Cp + 4 * Nm * Cp * Cp
    bytes_accessed = (Nm * Nk * 2 + num_i * Nk * Cp * 2 + Nm * Cp * 4
                      + 2 * Cp * Cp * 2 + Cp * 4)
    out_pad = pl.pallas_call(
        _gcn_relu_linear_kernel,
        out_shape=jax.ShapeDtypeStruct((Nm, Cp), jnp.float32),
        grid_spec=pltpu.PrefetchScalarGridSpec(
            num_scalar_prefetch=0,
            grid=(num_i, num_k),
            in_specs=[
                pl.BlockSpec((tm, tk), lambda i, n: (i, n)),   # A_hat tile
                pl.BlockSpec((tk, Cp), lambda i, n: (n, 0)),   # x tile (bf16)
                pl.BlockSpec((Cp, Cp), lambda i, n: (0, 0)),   # W_gcn (bf16)
                pl.BlockSpec((Cp, Cp), lambda i, n: (0, 0)),   # W_lin^T (bf16)
                pl.BlockSpec((1, Cp), lambda i, n: (0, 0)),    # b_lin (f32)
            ],
            out_specs=pl.BlockSpec((tm, Cp), lambda i, n: (i, 0)),
            scratch_shapes=[pltpu.VMEM((tm, Cp), jnp.float32)],
        ),
        compiler_params=pltpu.CompilerParams(
            dimension_semantics=("parallel", "arbitrary"),
            vmem_limit_bytes=vmem_limit),
        cost_estimate=pl.CostEstimate(flops=flops, transcendentals=0,
                                      bytes_accessed=bytes_accessed),
    )(a_hat, x_b16, w_gcn.astype(jnp.bfloat16),
      params["lin_w_t"], params["lin_b"])

    return out_pad[:N, :C]


# ------------------------------- example ----------------------------------- #

if __name__ == "__main__":
    N, C = 32, 16                      # num_nodes, input_dim
    key = jax.random.PRNGKey(0)
    kx, kp = jax.random.split(key)

    x = jax.random.normal(kx, (N, C), jnp.float32)

    # Deterministic small graph: bidirectional ring + skip-3 edges (no self loops)
    i = jnp.arange(N, dtype=jnp.int32)
    src = jnp.concatenate([i, (i + 1) % N, i])
    dst = jnp.concatenate([(i + 1) % N, i, (i + 3) % N])
    edge_index = jnp.stack([src, dst], axis=0)     # (2, 96)

    params = prepare_params(make_raw_params(kp, C), C)

    fwd = jax.jit(evolve_gcn_h_forward)
    out = fwd(x, edge_index, params)
    jax.block_until_ready(out)
    assert out.shape == (N, C) and out.dtype == jnp.float32
    print("KERNEL_OK")
</pallas_src>

<mosaic_0001>
module attributes {stable_mosaic.version = 11 : i64} {
  func.func private @main(%arg0: i32) attributes {dimension_semantics = [#tpu.dimension_semantics<core_parallel>], iteration_bounds = array<i64: 2>, tpu.core_type = #tpu.core_type<sc_scalar_subcore>, window_params = []} {
    return
  }
}

module attributes {stable_mosaic.version = 11 : i64} {
  func.func private @main(%arg0: i32) attributes {dimension_semantics = [#tpu.dimension_semantics<core_parallel>], iteration_bounds = array<i64: 2>, tpu.core_type = #tpu.core_type<sc_scalar_subcore>, window_params = []} {
    return
  }
}

module attributes {stable_mosaic.version = 11 : i64} {
  func.func @_score_kernel(%arg0: i32, %arg1: memref<128x128xf32, #tpu.memory_space<vmem>>, %arg2: memref<8x128xf32, #tpu.memory_space<vmem>>, %arg3: memref<8x128xf32, #tpu.memory_space<vmem>>) attributes {dimension_semantics = [#tpu.dimension_semantics<parallel>], iteration_bounds = array<i64: 1>, scalar_prefetch = 0 : i64, scratch_operands = 0 : i64, tpu.core_type = #tpu.core_type<tc>, window_params = [{transform_indices = @transform_0, window_bounds = array<i64: 128, 128>}, {pipeline_mode = #tpu.pipeline_mode<synchronous>, transform_indices = @transform_1, window_bounds = array<i64: 8, 128>}, {transform_indices = @transform_2, window_bounds = array<i64: 8, 128>}]} {
    %c0 = arith.constant 0 : index
    %c0_0 = arith.constant 0 : index
    %0 = vector.load %arg2[%c0, %c0_0] : memref<8x128xf32, #tpu.memory_space<vmem>>, vector<8x128xf32>
    %c0_1 = arith.constant 0 : index
    %c0_2 = arith.constant 0 : index
    %1 = vector.load %arg1[%c0_1, %c0_2] : memref<128x128xf32, #tpu.memory_space<vmem>>, vector<128x128xf32>
    %cst = arith.constant dense<0.000000e+00> : vector<8x128xf32>
    %2 = tpu.matmul %0, %1, %cst {dimension_numbers = #tpu.dot_dimension_numbers<[1], [1], [0], [0], [0, 0, 1, 0], [], []>} : vector<8x128xf32>, vector<128x128xf32>, vector<8x128xf32> -> vector<8x128xf32>
    %3 = math.tanh %2 : vector<8x128xf32>
    %c0_3 = arith.constant 0 : index
    %c0_4 = arith.constant 0 : index
    %4 = vector.load %arg3[%c0_3, %c0_4] : memref<8x128xf32, #tpu.memory_space<vmem>>, vector<8x128xf32>
    tpu.vector_store %arg3[%c0_3, %c0_4], %3 {strides = array<i32>} : memref<8x128xf32, #tpu.memory_space<vmem>>, vector<8x128xf32>,
    return
  }
  func.func @transform_0(%arg0: i32) -> (i32, i32) {
    %c0_i32 = arith.constant 0 : i32
    %c0_i32_0 = arith.constant 0 : i32
    return %arg0, %c0_i32 : i32, i32
  }
  func.func @transform_1(%arg0: i32) -> (i32, i32) {
    %c0_i32 = arith.constant 0 : i32
    %c0_i32_0 = arith.constant 0 : i32
    %c0_i32_1 = arith.constant 0 : i32
    return %c0_i32, %c0_i32_0 : i32, i32
  }
  func.func @transform_2(%arg0: i32) -> (i32, i32) {
    %c0_i32 = arith.constant 0 : i32
    %c0_i32_0 = arith.constant 0 : i32
    return %c0_i32, %arg0 : i32, i32
  }
}

module attributes {stable_mosaic.version = 11 : i64} {
  func.func @_gru_step_kernel(%arg0: memref<128x128xf32, #tpu.memory_space<vmem>>, %arg1: memref<128x1xf32, #tpu.memory_space<vmem>>, %arg2: memref<128x128xbf16, #tpu.memory_space<vmem>>, %arg3: memref<128x384xbf16, #tpu.memory_space<vmem>>, %arg4: memref<128x384xbf16, #tpu.memory_space<vmem>>, %arg5: memref<1x384xf32, #tpu.memory_space<vmem>>, %arg6: memref<1x384xf32, #tpu.memory_space<vmem>>, %arg7: memref<128x128xf32, #tpu.memory_space<vmem>>) attributes {dimension_semantics = [], scalar_prefetch = 0 : i64, scratch_operands = 0 : i64, tpu.core_type = #tpu.core_type<tc>} {
    %c0 = arith.constant 0 : index
    %c0_0 = arith.constant 0 : index
    %0 = vector.load %arg0[%c0, %c0_0] : memref<128x128xf32, #tpu.memory_space<vmem>>, vector<128x128xf32>
    %c0_1 = arith.constant 0 : index
    %c0_2 = arith.constant 0 : index
    %1 = vector.load %arg1[%c0_1, %c0_2] : memref<128x1xf32, #tpu.memory_space<vmem>>, vector<128x1xf32>
    %2 = vector.broadcast %1 : vector<128x1xf32> to vector<128x128xf32>
    %3 = arith.mulf %0, %2 : vector<128x128xf32>
    %4 = arith.truncf %3 : vector<128x128xf32> to vector<128x128xbf16>
    %c0_3 = arith.constant 0 : index
    %c0_4 = arith.constant 0 : index
    %5 = vector.load %arg2[%c0_3, %c0_4] : memref<128x128xbf16, #tpu.memory_space<vmem>>, vector<128x128xbf16>
    %c0_5 = arith.constant 0 : index
    %c0_6 = arith.constant 0 : index
    %6 = vector.load %arg3[%c0_5, %c0_6] : memref<128x384xbf16, #tpu.memory_space<vmem>>, vector<128x384xbf16>
    %cst = arith.constant dense<0.000000e+00> : vector<128x384xf32>
    %7 = tpu.matmul %4, %6, %cst {dimension_numbers = #tpu.dot_dimension_numbers<[1], [0], [0], [1], [0, 0, 1, 1], [], []>} : vector<128x128xbf16>, vector<128x384xbf16>, vector<128x384xf32> -> vector<128x384xf32>
    %c0_7 = arith.constant 0 : index
    %c0_8 = arith.constant 0 : index
    %8 = vector.load %arg5[%c0_7, %c0_8] : memref<1x384xf32, #tpu.memory_space<vmem>>, vector<1x384xf32>
    %9 = vector.broadcast %8 : vector<1x384xf32> to vector<128x384xf32>
    %10 = arith.addf %7, %9 : vector<128x384xf32>
    %c0_9 = arith.constant 0 : index
    %c0_10 = arith.constant 0 : index
    %11 = vector.load %arg4[%c0_9, %c0_10] : memref<128x384xbf16, #tpu.memory_space<vmem>>, vector<128x384xbf16>
    %cst_11 = arith.constant dense<0.000000e+00> : vector<128x384xf32>
    %12 = tpu.matmul %5, %11, %cst_11 {dimension_numbers = #tpu.dot_dimension_numbers<[1], [0], [0], [1], [0, 0, 1, 1], [], []>} : vector<128x128xbf16>, vector<128x384xbf16>, vector<128x384xf32> -> vector<128x384xf32>
    %c0_12 = arith.constant 0 : index
    %c0_13 = arith.constant 0 : index
    %13 = vector.load %arg6[%c0_12, %c0_13] : memref<1x384xf32, #tpu.memory_space<vmem>>, vector<1x384xf32>
    %14 = vector.broadcast %13 : vector<1x384xf32> to vector<128x384xf32>
    %15 = arith.addf %12, %14 : vector<128x384xf32>
    %16 = vector.extract_strided_slice %10 {offsets = [0, 0], sizes = [128, 128], strides = [1, 1]} : vector<128x384xf32> to vector<128x128xf32>
    %17 = vector.extract_strided_slice %10 {offsets = [0, 128], sizes = [128, 128], strides = [1, 1]} : vector<128x384xf32> to vector<128x128xf32>
    %18 = vector.extract_strided_slice %10 {offsets = [0, 256], sizes = [128, 128], strides = [1, 1]} : vector<128x384xf32> to vector<128x128xf32>
    %19 = vector.extract_strided_slice %15 {offsets = [0, 0], sizes = [128, 128], strides = [1, 1]} : vector<128x384xf32> to vector<128x128xf32>
    %20 = vector.extract_strided_slice %15 {offsets = [0, 128], sizes = [128, 128], strides = [1, 1]} : vector<128x384xf32> to vector<128x128xf32>
    %21 = vector.extract_strided_slice %15 {offsets = [0, 256], sizes = [128, 128], strides = [1, 1]} : vector<128x384xf32> to vector<128x128xf32>
    %22 = arith.addf %16, %19 : vector<128x128xf32>
    %23 = arith.negf %22 : vector<128x128xf32>
    %24 = math.exp %23 : vector<128x128xf32>
    %cst_14 = arith.constant 1.000000e+00 : f32
    %25 = vector.broadcast %cst_14 : f32 to vector<128x128xf32>
    %26 = arith.addf %25, %24 : vector<128x128xf32>
    %27 = arith.divf %25, %26 : vector<128x128xf32>
    %28 = arith.addf %17, %20 : vector<128x128xf32>
    %29 = arith.negf %28 : vector<128x128xf32>
    %30 = math.exp %29 : vector<128x128xf32>
    %cst_15 = arith.constant 1.000000e+00 : f32
    %31 = vector.broadcast %cst_15 : f32 to vector<128x128xf32>
    %32 = arith.addf %31, %30 : vector<128x128xf32>
    %33 = arith.divf %31, %32 : vector<128x128xf32>
    %34 = arith.mulf %27, %21 : vector<128x128xf32>
    %35 = arith.addf %18, %34 : vector<128x128xf32>
    %36 = math.tanh %35 : vector<128x128xf32>
    %cst_16 = arith.constant 1.000000e+00 : f32
    %37 = vector.broadcast %cst_16 : f32 to vector<128x128xf32>
    %38 = arith.subf %37, %33 : vector<128x128xf32>
    %39 = arith.mulf %38, %36 : vector<128x128xf32>
    %40 = arith.extf %5 : vector<128x128xbf16> to vector<128x128xf32>
    %41 = arith.mulf %33, %40 : vector<128x128xf32>
    %42 = arith.addf %39, %41 : vector<128x128xf32>
    %c0_17 = arith.constant 0 : index
    %c0_18 = arith.constant 0 : index
    %43 = vector.load %arg7[%c0_17, %c0_18] : memref<128x128xf32, #tpu.memory_space<vmem>>, vector<128x128xf32>
    tpu.vector_store %arg7[%c0_17, %c0_18], %42 {strides = array<i32>} : memref<128x128xf32, #tpu.memory_space<vmem>>, vector<128x128xf32>,
    return
  }
}

module attributes {stable_mosaic.version = 11 : i64} {
  func.func @_gcn_relu_linear_kernel(%arg0: i32, %arg1: i32, %arg2: memref<32x128xbf16, #tpu.memory_space<vmem>>, %arg3: memref<128x128xbf16, #tpu.memory_space<vmem>>, %arg4: memref<128x128xbf16, #tpu.memory_space<vmem>>, %arg5: memref<128x128xbf16, #tpu.memory_space<vmem>>, %arg6: memref<1x128xf32, #tpu.memory_space<vmem>>, %arg7: memref<32x128xf32, #tpu.memory_space<vmem>>, %arg8: memref<32x128xf32, #tpu.memory_space<vmem>>) attributes {dimension_semantics = [#tpu.dimension_semantics<parallel>, #tpu.dimension_semantics<arbitrary>], iteration_bounds = array<i64: 1, 1>, scalar_prefetch = 0 : i64, scratch_operands = 1 : i64, tpu.core_type = #tpu.core_type<tc>, window_params = [{transform_indices = @transform_0, window_bounds = array<i64: 32, 128>}, {transform_indices = @transform_1, window_bounds = array<i64: 128, 128>}, {pipeline_mode = #tpu.pipeline_mode<synchronous>, transform_indices = @transform_2, window_bounds = array<i64: 128, 128>}, {pipeline_mode = #tpu.pipeline_mode<synchronous>, transform_indices = @transform_3, window_bounds = array<i64: 128, 128>}, {pipeline_mode = #tpu.pipeline_mode<synchronous>, transform_indices = @transform_4, window_bounds = array<i64: 1, 128>}, {transform_indices = @transform_5, window_bounds = array<i64: 32, 128>}]} {
    %c0_i32 = arith.constant 0 : i32
    %0 = arith.cmpi eq, %arg1, %c0_i32 : i32
    %1 = arith.extui %0 : i1 to i32
    %c0_i32_0 = arith.constant 0 : i32
    %2 = arith.cmpi ne, %1, %c0_i32_0 : i32
    scf.if %2 {
      %cst_10 = arith.constant 0.000000e+00 : f32
      %12 = vector.broadcast %cst_10 : f32 to vector<32x128xf32>
      %c0_11 = arith.constant 0 : index
      %c0_12 = arith.constant 0 : index
      %13 = vector.load %arg8[%c0_11, %c0_12] : memref<32x128xf32, #tpu.memory_space<vmem>>, vector<32x128xf32>
      tpu.vector_store %arg8[%c0_11, %c0_12], %12 {strides = array<i32>} : memref<32x128xf32, #tpu.memory_space<vmem>>, vector<32x128xf32>,
    } else {
    }
    %c0 = arith.constant 0 : index
    %c0_1 = arith.constant 0 : index
    %3 = vector.load %arg8[%c0, %c0_1] : memref<32x128xf32, #tpu.memory_space<vmem>>, vector<32x128xf32>
    %c0_2 = arith.constant 0 : index
    %c0_3 = arith.constant 0 : index
    %4 = vector.load %arg2[%c0_2, %c0_3] : memref<32x128xbf16, #tpu.memory_space<vmem>>, vector<32x128xbf16>
    %c0_4 = arith.constant 0 : index
    %c0_5 = arith.constant 0 : index
    %5 = vector.load %arg3[%c0_4, %c0_5] : memref<128x128xbf16, #tpu.memory_space<vmem>>, vector<128x128xbf16>
    %cst = arith.constant dense<0.000000e+00> : vector<32x128xf32>
    %6 = tpu.matmul %4, %5, %cst {dimension_numbers = #tpu.dot_dimension_numbers<[1], [0], [0], [1], [0, 0, 1, 1], [], []>} : vector<32x128xbf16>, vector<128x128xbf16>, vector<32x128xf32> -> vector<32x128xf32>
    %7 = arith.addf %3, %6 : vector<32x128xf32>
    %c0_6 = arith.constant 0 : index
    %c0_7 = arith.constant 0 : index
    %8 = vector.load %arg8[%c0_6, %c0_7] : memref<32x128xf32, #tpu.memory_space<vmem>>, vector<32x128xf32>
    tpu.vector_store %arg8[%c0_6, %c0_7], %7 {strides = array<i32>} : memref<32x128xf32, #tpu.memory_space<vmem>>, vector<32x128xf32>,
    %c0_i32_8 = arith.constant 0 : i32
    %9 = arith.cmpi eq, %arg1, %c0_i32_8 : i32
    %10 = arith.extui %9 : i1 to i32
    %c0_i32_9 = arith.constant 0 : i32
    %11 = arith.cmpi ne, %10, %c0_i32_9 : i32
    scf.if %11 {
      %c0_10 = arith.constant 0 : index
      %c0_11 = arith.constant 0 : index
      %12 = vector.load %arg8[%c0_10, %c0_11] : memref<32x128xf32, #tpu.memory_space<vmem>>, vector<32x128xf32>
      %13 = arith.truncf %12 : vector<32x128xf32> to vector<32x128xbf16>
      %c0_12 = arith.constant 0 : index
      %c0_13 = arith.constant 0 : index
      %14 = vector.load %arg4[%c0_12, %c0_13] : memref<128x128xbf16, #tpu.memory_space<vmem>>, vector<128x128xbf16>
      %cst_14 = arith.constant dense<0.000000e+00> : vector<32x128xf32>
      %15 = tpu.matmul %13, %14, %cst_14 {dimension_numbers = #tpu.dot_dimension_numbers<[1], [0], [0], [1], [0, 0, 1, 1], [], []>} : vector<32x128xbf16>, vector<128x128xbf16>, vector<32x128xf32> -> vector<32x128xf32>
      %cst_15 = arith.constant 0.000000e+00 : f32
      %16 = vector.broadcast %cst_15 : f32 to vector<32x128xf32>
      %17 = arith.maximumf %15, %16 : vector<32x128xf32>
      %18 = arith.truncf %17 : vector<32x128xf32> to vector<32x128xbf16>
      %c0_16 = arith.constant 0 : index
      %c0_17 = arith.constant 0 : index
      %19 = vector.load %arg5[%c0_16, %c0_17] : memref<128x128xbf16, #tpu.memory_space<vmem>>, vector<128x128xbf16>
      %cst_18 = arith.constant dense<0.000000e+00> : vector<32x128xf32>
      %20 = tpu.matmul %18, %19, %cst_18 {dimension_numbers = #tpu.dot_dimension_numbers<[1], [0], [0], [1], [0, 0, 1, 1], [], []>} : vector<32x128xbf16>, vector<128x128xbf16>, vector<32x128xf32> -> vector<32x128xf32>
      %c0_19 = arith.constant 0 : index
      %c0_20 = arith.constant 0 : index
      %21 = vector.load %arg6[%c0_19, %c0_20] : memref<1x128xf32, #tpu.memory_space<vmem>>, vector<1x128xf32>
      %22 = vector.broadcast %21 : vector<1x128xf32> to vector<32x128xf32>
      %23 = arith.addf %20, %22 : vector<32x128xf32>
      %c0_21 = arith.constant 0 : index
      %c0_22 = arith.constant 0 : index
      %24 = vector.load %arg7[%c0_21, %c0_22] : memref<32x128xf32, #tpu.memory_space<vmem>>, vector<32x128xf32>
      tpu.vector_store %arg7[%c0_21, %c0_22], %23 {strides = array<i32>} : memref<32x128xf32, #tpu.memory_space<vmem>>, vector<32x128xf32>,
    } else {
    }
    return
  }
  func.func @transform_0(%arg0: i32, %arg1: i32) -> (i32, i32) {
    %c0_i32 = arith.constant 0 : i32
    return %arg0, %arg1 : i32, i32
  }
  func.func @transform_1(%arg0: i32, %arg1: i32) -> (i32, i32) {
    %c0_i32 = arith.constant 0 : i32
    %c0_i32_0 = arith.constant 0 : i32
    return %arg1, %c0_i32 : i32, i32
  }
  func.func @transform_2(%arg0: i32, %arg1: i32) -> (i32, i32) {
    %c0_i32 = arith.constant 0 : i32
    %c0_i32_0 = arith.constant 0 : i32
    %c0_i32_1 = arith.constant 0 : i32
    return %c0_i32, %c0_i32_0 : i32, i32
  }
  func.func @transform_3(%arg0: i32, %arg1: i32) -> (i32, i32) {
    %c0_i32 = arith.constant 0 : i32
    %c0_i32_0 = arith.constant 0 : i32
    %c0_i32_1 = arith.constant 0 : i32
    return %c0_i32, %c0_i32_0 : i32, i32
  }
  func.func @transform_4(%arg0: i32, %arg1: i32) -> (i32, i32) {
    %c0_i32 = arith.constant 0 : i32
    %c0_i32_0 = arith.constant 0 : i32
    %c0_i32_1 = arith.constant 0 : i32
    return %c0_i32, %c0_i32_0 : i32, i32
  }
  func.func @transform_5(%arg0: i32, %arg1: i32) -> (i32, i32) {
    %c0_i32 = arith.constant 0 : i32
    %c0_i32_0 = arith.constant 0 : i32
    return %arg0, %c0_i32 : i32, i32
  }
}

</mosaic_0001>

<bundles_post_ra>
// kernel: evolve_gcn_h_forward.3
= control target key start
LH: loop header
LB: loop body
LE: loop exit
PB: predicated region body
PF: predicated region fallthrough
CT: control target
= control target key end

     0   :  { %v160_v0 = vmov 0.0   ;;  %vm161_vm0 = vmmov 0   ;;  %s231_s0 = inlined_call_operand.vmem [shape: f32[128,128], index: 0, kind: input, shape index: {}]   ;;  %s232_s1 = inlined_call_operand.vmem [shape: f32[8,128], index: 1, kind: input, shape index: {}]   ;;  %s233_s2 = inlined_call_operand.vmem [shape: f32[8,128], index: 2, kind: output, shape index: {}]  }
   0x1   :  { %121 = vmatprep.subr.mxu0 %v160_v0  ;;  %v27_v1 = vld [vmem:[%s231_s0 + $0x78] sm:$0xff]  ;;  %153 = vmatprep.mubr.msk.f32.mxu0 %vm161_vm0, %v160_v0  ;;  %v26_v2 = vld [vmem:[%s231_s0 + $0x70] sm:$0xff]  ;;  %v25_v3 = vld [vmem:[%s231_s0 + $0x68] sm:$0xff] }
   0x2   :  { %122 = vmatpush3.xpose.msra.mxu0 %v27_v1  ;;  %v24_v4 = vld [vmem:[%s231_s0 + $0x60] sm:$0xff]  ;;  %v23_v5 = vld [vmem:[%s231_s0 + $0x58] sm:$0xff]  ;;  %v22_v6 = vld [vmem:[%s231_s0 + $0x50] sm:$0xff] }
   0x3   :  { %123 = vmatprep.subr.mxu0 %v160_v0  ;;  %v21_v7 = vld [vmem:[%s231_s0 + $0x48] sm:$0xff]  ;;  %v20_v8 = vld [vmem:[%s231_s0 + $0x40] sm:$0xff]  ;;  %v19_v9 = vld [vmem:[%s231_s0 + $0x38] sm:$0xff] }
   0x4   :  { %v18_v10 = vld [vmem:[%s231_s0 + $0x30] sm:$0xff]  ;;  %v17_v11 = vld [vmem:[%s231_s0 + $0x28] sm:$0xff]  ;;  %v16_v12 = vld [vmem:[%s231_s0 + $0x20] sm:$0xff] }
   0x5   :  { %v15_v13 = vld [vmem:[%s231_s0 + $0x18] sm:$0xff]  ;;  %v14_v14 = vld [vmem:[%s231_s0 + $0x10] sm:$0xff]  ;;  %v13_v15 = vld [vmem:[%s231_s0 + $0x8] sm:$0xff] }
   0x6   :  { %124 = vmatpush3.xpose.msra.mxu0 %v26_v2  ;;  %v12_v16 = vld [vmem:[%s231_s0] sm:$0xff] }
   0x7   :  { %125 = vmatprep.subr.mxu0 %v160_v0  ;;  %v11_v17 = vld [vmem:[%s232_s1] sm:$0xff] }
   0xa   :  { %126 = vmatpush3.xpose.msra.mxu0 %v25_v3 }
   0xb   :  { %127 = vmatprep.subr.mxu0 %v160_v0 }
   0xe   :  { %128 = vmatpush3.xpose.msra.mxu0 %v24_v4 }
   0xf   :  { %129 = vmatprep.subr.mxu0 %v160_v0 }
  0x12   :  { %130 = vmatpush3.xpose.msra.mxu0 %v23_v5 }
  0x13   :  { %131 = vmatprep.subr.mxu0 %v160_v0 }
  0x16   :  { %132 = vmatpush3.xpose.msra.mxu0 %v22_v6 }
  0x17   :  { %133 = vmatprep.subr.mxu0 %v160_v0 }
  0x1a   :  { %134 = vmatpush3.xpose.msra.mxu0 %v21_v7 }
  0x1b   :  { %135 = vmatprep.subr.mxu0 %v160_v0 }
  0x1e   :  { %136 = vmatpush3.xpose.msra.mxu0 %v20_v8 }
  0x1f   :  { %137 = vmatprep.subr.mxu0 %v160_v0 }
  0x22   :  { %138 = vmatpush3.xpose.msra.mxu0 %v19_v9 }
  0x23   :  { %139 = vmatprep.subr.mxu0 %v160_v0 }
  0x26   :  { %140 = vmatpush3.xpose.msra.mxu0 %v18_v10 }
  0x27   :  { %141 = vmatprep.subr.mxu0 %v160_v0 }
  0x2a   :  { %142 = vmatpush3.xpose.msra.mxu0 %v17_v11 }
  0x2b   :  { %143 = vmatprep.subr.mxu0 %v160_v0 }
  0x2e   :  { %144 = vmatpush3.xpose.msra.mxu0 %v16_v12 }
  0x2f   :  { %145 = vmatprep.subr.mxu0 %v160_v0 }
  0x32   :  { %146 = vmatpush3.xpose.msra.mxu0 %v15_v13 }
  0x33   :  { %147 = vmatprep.subr.mxu0 %v160_v0 }
  0x36   :  { %148 = vmatpush3.xpose.msra.mxu0 %v14_v14 }
  0x37   :  { %149 = vmatprep.subr.mxu0 %v160_v0 }
  0x3a   :  { %150 = vmatpush3.xpose.msra.mxu0 %v13_v15 }
  0x3b   :  { %151 = vmatprep.subr.mxu0 %v160_v0 }
  0x3e   :  { %152 = vmatpush3.xpose.msra.mxu0 %v12_v16 }
  0x41   :  { %154 = vmatmul.mubr.f32.vlgmr.msra.gmra.mxu0 %v11_v17 }
 0x101   :  { %v94_v18 = vpop.f32.mrf.mxu0 }
 0x102   :  { %158 = vtanh.f32 %v94_v18 }
 0x103   :  { %v155_v19 = vpop.f32.mrf.mxu0 }
 0x10f   :  { %v159_v20 = vpop.eup %158 }
 0x110   :  { %99 = vst [vmem:[%s233_s2] sm:$0xff] %v159_v20 }

// kernel: evolve_gcn_h_forward.4
= control target key start
LH: loop header
LB: loop body
LE: loop exit
PB: predicated region body
PF: predicated region fallthrough
CT: control target
= control target key end

     0   :  { %v1804_v0 = vmov 0   ;;  %s2584_s1 = inlined_call_operand.vmem [shape: f32[128,1], index: 1, kind: input, shape index: {}]   ;;  %s2585_s3 = inlined_call_operand.vmem [shape: bf16[128,384], index: 3, kind: input, shape index: {}]   ;;  %s2586_s4 = inlined_call_operand.vmem [shape: bf16[128,384], index: 4, kind: input, shape index: {}]   ;;  %s2587_s0 = inlined_call_operand.vmem [shape: f32[128,128], index: 0, kind: input, shape index: {}]   ;;  %s2588_s2 = inlined_call_operand.vmem [shape: bf16[128,128], index: 2, kind: input, shape index: {}]   ;;  %s2589_s5 = inlined_call_operand.vmem [shape: f32[1,384], index: 5, kind: input, shape index: {}]   ;;  %s2590_s6 = inlined_call_operand.vmem [shape: f32[1,384], index: 6, kind: input, shape index: {}]   ;;  %s2591_s7 = inlined_call_operand.vmem [shape: f32[128,128], index: 7, kind: output, shape index: {}]  }
   0x1   :  { %1559 = vset.pattern.permute.xlu1 %v1804_v0  ;;  %1558 = vset.pattern.permute.xlu0 %v1804_v0  ;;  %v45_v1 = vld [vmem:[%s2584_s1 + $0x10] sm:$0xff]  ;;  %v43_v2 = vld [vmem:[%s2584_s1] sm:$0xff]  ;;  %v46_v3 = vld [vmem:[%s2584_s1 + $0x18] sm:$0xff] }
   0x2   :  { %71 = vperm.xlu1 %1559, %v45_v1   ;;  %61 = vperm.xlu0 %1558, %v43_v2   ;;  %v44_v4 = vld [vmem:[%s2584_s1 + $0x8] sm:$0xff]  ;;  %v47_v6 = vld [vmem:[%s2584_s1 + $0x20] sm:$0xff]  ;;  %v1562_v8 = vld [vmem:[%s2585_s3 + $0xb0] ss:$12 sps:$4 sm:$0xff]  }
   0x3   :  { %388 = vmatprep.mubr.bf16.mxu0 %v1804_v0  ;;  %v48_v5 = vld [vmem:[%s2584_s1 + $0x28] sm:$0xff]  ;;  %v50_v10 = vld [vmem:[%s2584_s1 + $0x38] sm:$0xff]  ;;  %v1564_v11 = vld [vmem:[%s2585_s3 + $0x94] ss:$12 sps:$4 sm:$0xff]   ;;  %1493 = vmatprep.subr.bf16.mxu1 %v1562_v8 }
   0x4   :  { %v1560_v7 = vld [vmem:[%s2585_s3 + $0xac] ss:$12 sps:$4 sm:$0xff]   ;;  %v1563_v9 = vld [vmem:[%s2585_s3 + $0xa8] ss:$12 sps:$4 sm:$0xff]   ;;  %v1567_v14 = vld [vmem:[%s2585_s3 + $0x90] ss:$12 sps:$4 sm:$0xff]   ;;  %1494 = vmatpush3.bf16.msra.mxu1 %v1562_v8 }
   0x5   :  { %356 = vmatprep.subr.bf16.mxu0 %v1560_v7  ;;  %v49_v12 = vld [vmem:[%s2584_s1 + $0x30] sm:$0xff]  ;;  %v1566_v13 = vld [vmem:[%s2585_s3 + $0x98] ss:$12 sps:$4 sm:$0xff]   ;;  %v1568_v15 = vld [vmem:[%s2585_s3 + $0x7c] ss:$12 sps:$4 sm:$0xff]  }
   0x6   :  { %76 = vperm.xlu1 %1559, %v46_v3   ;;  %66 = vperm.xlu0 %1558, %v44_v4   ;;  %v1570_v16 = vld [vmem:[%s2585_s3 + $0x80] ss:$12 sps:$4 sm:$0xff]   ;;  %v1571_v19 = vld [vmem:[%s2585_s3 + $0x78] ss:$12 sps:$4 sm:$0xff]   ;;  %v1574_v22 = vld [vmem:[%s2585_s3 + $0x68] ss:$12 sps:$4 sm:$0xff]  }
   0x7   :  { %357 = vmatpush1.bf16.msra.mxu0 %v1563_v9  ;;  %1495 = vmatprep.subr.bf16.mxu1 %v1566_v13  ;;  %v52_v17 = vld [vmem:[%s2584_s1 + $0x48] sm:$0xff]  ;;  %v51_v18 = vld [vmem:[%s2584_s1 + $0x40] sm:$0xff]  ;;  %v54_v21 = vld [vmem:[%s2584_s1 + $0x58] sm:$0xff] }
   0x8   :  { %358 = vmatprep.subr.bf16.mxu0 %v1564_v11  ;;  %1496 = vmatpush3.bf16.msra.mxu1 %v1566_v13  ;;  %v1572_v20 = vld [vmem:[%s2585_s3 + $0x64] ss:$12 sps:$4 sm:$0xff]   ;;  %v1575_v24 = vld [vmem:[%s2585_s3 + $0x60] ss:$12 sps:$4 sm:$0xff]   ;;  %v1579_v29 = vld [vmem:[%s2585_s3 + $0x48] ss:$12 sps:$4 sm:$0xff]  }
   0x9   :  { %1497 = vmatprep.subr.bf16.mxu1 %v1570_v16  ;;  %v53_v23 = vld [vmem:[%s2584_s1 + $0x50] sm:$0xff]  ;;  %v1576_v25 = vld [vmem:[%s2585_s3 + $0x4c] ss:$12 sps:$4 sm:$0xff]   ;;  %v55_v28 = vld [vmem:[%s2584_s1 + $0x60] sm:$0xff] }
   0xa   :  { %86 = vperm.xlu1 %1559, %v48_v5   ;;  %81 = vperm.xlu0 %1558, %v47_v6   ;;  %v1578_v26 = vld [vmem:[%s2585_s3 + $0x50] ss:$12 sps:$4 sm:$0xff]   ;;  %v56_v27 = vld [vmem:[%s2584_s1 + $0x68] sm:$0xff]  ;;  %v1580_v30 = vld [vmem:[%s2585_s3 + $0x34] ss:$12 sps:$4 sm:$0xff]  }
   0xb   :  { %359 = vmatpush1.bf16.msra.mxu0 %v1567_v14  ;;  %v1582_v31 = vld [vmem:[%s2585_s3 + $0x38] ss:$12 sps:$4 sm:$0xff]   ;;  %v57_v33 = vld [vmem:[%s2584_s1 + $0x70] sm:$0xff]  ;;  %v1584_v35 = vld [vmem:[%s2585_s3 + $0x1c] ss:$12 sps:$4 sm:$0xff]  }
   0xc   :  { %360 = vmatprep.subr.bf16.mxu0 %v1568_v15  ;;  %1498 = vmatpush3.bf16.msra.mxu1 %v1570_v16  ;;  %v58_v32 = vld [vmem:[%s2584_s1 + $0x78] sm:$0xff]  ;;  %v1586_v36 = vld [vmem:[%s2585_s3 + $0x20] ss:$12 sps:$4 sm:$0xff]   ;;  %v1588_v38 = vld [vmem:[%s2585_s3 + $0x4] ss:$12 sps:$4 sm:$0xff]  }
   0xd   :  { %1499 = vmatprep.subr.bf16.mxu1 %v1574_v22  ;;  %v1583_v34 = vld [vmem:[%s2585_s3 + $0x30] ss:$12 sps:$4 sm:$0xff]   ;;  %v1587_v37 = vld [vmem:[%s2585_s3 + $0x18] ss:$12 sps:$4 sm:$0xff]   ;;  %v1590_v39 = vld [vmem:[%s2585_s3 + $0x8] ss:$12 sps:$4 sm:$0xff]  }
   0xe   :  { %96 = vperm.xlu1 %1559, %v50_v10   ;;  %91 = vperm.xlu0 %1558, %v49_v12   ;;  %v1591_v40 = vld [vmem:[%s2585_s3] ss:$12 sps:$4 sm:$0xff]   ;;  %v1616_v42 = vld [vmem:[%s2586_s4 + $0xb0] ss:$12 sps:$4 sm:$0xff]   ;;  %v1592_v59 = vld [vmem:[%s2586_s4 + $0xa8] ss:$12 sps:$4 sm:$0xff]  }
   0xf   :  { %361 = vmatpush1.bf16.msra.mxu0 %v1571_v19  ;;  %v1594_v41 = vld [vmem:[%s2586_s4 + $0xac] ss:$12 sps:$4 sm:$0xff]   ;;  %v29_v45 = vld [vmem:[%s2587_s0 + $0x10] sm:$0xff]  ;;  %v27_v46 = vld [vmem:[%s2587_s0] sm:$0xff] }
  0x10   :  { %362 = vmatprep.subr.bf16.mxu0 %v1572_v20  ;;  %1500 = vmatpush3.bf16.msra.mxu1 %v1574_v22  ;;  %v30_v47 = vld [vmem:[%s2587_s0 + $0x18] sm:$0xff]  ;;  %v28_v48 = vld [vmem:[%s2587_s0 + $0x8] sm:$0xff]  ;;  %v31_v56 = vld [vmem:[%s2587_s0 + $0x20] sm:$0xff] }
  0x11   :  { %1501 = vmatprep.subr.bf16.mxu1 %v1578_v26  ;;  %v32_v55 = vld [vmem:[%s2587_s0 + $0x28] sm:$0xff]  ;;  %v1597_v62 = vld [vmem:[%s2586_s4 + $0x94] ss:$12 sps:$4 sm:$0xff]   ;;  %v1618_v63 = vld [vmem:[%s2586_s4 + $0x98] ss:$12 sps:$4 sm:$0xff]  }
  0x12   :  { %106 = vperm.xlu1 %1559, %v52_v17   ;;  %101 = vperm.xlu0 %1558, %v51_v18   ;;  %v34_v3 = vld [vmem:[%s2587_s0 + $0x38] sm:$0xff]  ;;  %v33_v4 = vld [vmem:[%s2587_s0 + $0x30] sm:$0xff]  ;;  %v1620_v10 = vld [vmem:[%s2586_s4 + $0x80] ss:$12 sps:$4 sm:$0xff]  }
  0x13   :  { %363 = vmatpush1.bf16.msra.mxu0 %v1575_v24  ;;  %v1595_v6 = vld [vmem:[%s2586_s4 + $0x90] ss:$12 sps:$4 sm:$0xff]   ;;  %v36_v13 = vld [vmem:[%s2587_s0 + $0x48] sm:$0xff]  ;;  %v35_v14 = vld [vmem:[%s2587_s0 + $0x40] sm:$0xff] }
  0x14   :  { %364 = vmatprep.subr.bf16.mxu0 %v1576_v25  ;;  %1502 = vmatpush3.bf16.msra.mxu1 %v1578_v26  ;;  %v1600_v9 = vld [vmem:[%s2586_s4 + $0x7c] ss:$12 sps:$4 sm:$0xff]   ;;  %v1598_v16 = vld [vmem:[%s2586_s4 + $0x78] ss:$12 sps:$4 sm:$0xff]   ;;  %v37_v24 = vld [vmem:[%s2587_s0 + $0x50] sm:$0xff] }
  0x15   :  { %1503 = vmatprep.subr.bf16.mxu1 %v1582_v31  ;;  %v1603_v19 = vld [vmem:[%s2586_s4 + $0x64] ss:$12 sps:$4 sm:$0xff]   ;;  %v1621_v20 = vld [vmem:[%s2586_s4 + $0x68] ss:$12 sps:$4 sm:$0xff]   ;;  %v1601_v26 = vld [vmem:[%s2586_s4 + $0x60] ss:$12 sps:$4 sm:$0xff]  }
  0x16   :  { %116 = vperm.xlu1 %1559, %v54_v21   ;;  %111 = vperm.xlu0 %1558, %v53_v23   ;;  %v38_v23 = vld [vmem:[%s2587_s0 + $0x58] sm:$0xff] }
  0x17   :  { %365 = vmatpush1.bf16.msra.mxu0 %v1579_v29  ;;  %v1606_v29 = vld [vmem:[%s2586_s4 + $0x4c] ss:$12 sps:$4 sm:$0xff]  }
  0x18   :  { %366 = vmatprep.subr.bf16.mxu0 %v1580_v30  ;;  %1504 = vmatpush3.bf16.msra.mxu1 %v1582_v31  ;;  %v1623_v30 = vld [vmem:[%s2586_s4 + $0x50] ss:$12 sps:$4 sm:$0xff]  }
  0x19   :  { %1505 = vmatprep.subr.bf16.mxu1 %v1586_v36 }
  0x1a   :  { %126 = vperm.xlu1 %1559, %v56_v27   ;;  %121 = vperm.xlu0 %1558, %v55_v28  }
  0x1b   :  { %367 = vmatpush1.bf16.msra.mxu0 %v1583_v34  ;;  %v39_v34 = vld [vmem:[%s2587_s0 + $0x60] sm:$0xff] }
  0x1c   :  { %368 = vmatprep.subr.bf16.mxu0 %v1584_v35  ;;  %1506 = vmatpush3.bf16.msra.mxu1 %v1586_v36  ;;  %v1604_v36 = vld [vmem:[%s2586_s4 + $0x48] ss:$12 sps:$4 sm:$0xff]  }
  0x1d   :  { %1507 = vmatprep.subr.bf16.mxu1 %v1590_v39 }
  0x1e   :  { %136 = vperm.xlu1 %1559, %v58_v32   ;;  %131 = vperm.xlu0 %1558, %v57_v33   ;;  %v40_v33 = vld [vmem:[%s2587_s0 + $0x68] sm:$0xff] }
  0x1f   :  { %369 = vmatpush1.bf16.msra.mxu0 %v1587_v37 }
  0x20   :  { %370 = vmatprep.subr.bf16.mxu0 %v1588_v38  ;;  %1508 = vmatpush3.bf16.msra.mxu1 %v1590_v39  ;;  %v1609_v39 = vld [vmem:[%s2586_s4 + $0x34] ss:$12 sps:$4 sm:$0xff]  }
  0x21   :  { %791 = vmatprep.subr.bf16.mxu1 %v1594_v41 }
  0x23   :  { %371 = vmatpush1.bf16.msra.mxu0 %v1591_v40  ;;  %v1624_v40 = vld [vmem:[%s2586_s4 + $0x38] ss:$12 sps:$4 sm:$0xff]  }
  0x24   :  { %1525 = vmatprep.subr.bf16.mxu0 %v1616_v42 }
  0x7d   :  { %v72_v43 = vpop.permute.xlu1 %71  ;;  %v62_v44 = vpop.permute.xlu0 %61 }
  0x7e   :  { %v141_v51 = vmul.f32 %v72_v43, %v29_v45  ;;  %v139_v52 = vmul.f32 %v62_v44, %v27_v46  ;;  %v42_v43 = vld [vmem:[%s2587_s0 + $0x78] sm:$0xff]  ;;  %v41_v44 = vld [vmem:[%s2587_s0 + $0x70] sm:$0xff] }
  0x7f   :  { %v1607_v46 = vld [vmem:[%s2586_s4 + $0x30] ss:$12 sps:$4 sm:$0xff]  }
  0x81   :  { %v77_v49 = vpop.permute.xlu1 %76  ;;  %v67_v50 = vpop.permute.xlu0 %66 }
  0x82   :  { %v142_v53 = vmul.f32 %v77_v49, %v30_v47  ;;  %v140_v54 = vmul.f32 %v67_v50, %v28_v48  ;;  %v1612_v49 = vld [vmem:[%s2586_s4 + $0x1c] ss:$12 sps:$4 sm:$0xff]   ;;  %v1626_v50 = vld [vmem:[%s2586_s4 + $0x20] ss:$12 sps:$4 sm:$0xff]  }
  0x84   :  { %v156_v57 = vpack.c.bf16 %v142_v53, %v141_v51  ;;  %v155_v58 = vpack.c.bf16 %v140_v54, %v139_v52  ;;  %v1610_v54 = vld [vmem:[%s2586_s4 + $0x18] ss:$12 sps:$4 sm:$0xff]  }
  0x85   :  { %v87_v60 = vpop.permute.xlu1 %86  ;;  %v82_v61 = vpop.permute.xlu0 %81 }
  0x86   :  { %v144_v1 = vmul.f32 %v87_v60, %v32_v55  ;;  %v143_v2 = vmul.f32 %v82_v61, %v31_v56  ;;  %389 = vmatmul.mubr.bf16.vlgmr.msra.gmra.mxu0 %v155_v58  ;;  %1509 = vmatprep.mubr.bf16.mxu1 %v155_v58  ;;  %v1615_v55 = vld [vmem:[%s2586_s4 + $0x4] ss:$12 sps:$4 sm:$0xff]   ;;  %v1627_v56 = vld [vmem:[%s2586_s4 + $0x8] ss:$12 sps:$4 sm:$0xff]   ;;  %v2128_v61 = vld [vmem:[%s2588_s2 + $0x18] sm:$0xff]  }
  0x87   :  { %1510 = vmatmul.mubr.bf16.vlgmr.msra.gmra.mxu1 %v156_v57  ;;  %398 = vmatprep.mubr.bf16.mxu0 %v1804_v0  ;;  %v2103_v58 = vld [vmem:[%s2588_s2] sm:$0xff]   ;;  %v2120_v60 = vld [vmem:[%s2588_s2 + $0x10] sm:$0xff]  }
  0x88   :  { %v157_v5 = vpack.c.bf16 %v144_v1, %v143_v2  ;;  %792 = vmatpush1.bf16.msra.mxu1 %v1592_v59  ;;  %1526 = vmatpush3.bf16.msra.mxu0 %v1616_v42  ;;  %v2112_v59 = vld [vmem:[%s2588_s2 + $0x8] sm:$0xff]   ;;  %v175_v1 = vld [vmem:[%s2588_s2 + $0x30] sm:$0xff]   ;;  %v177_v2 = vld [vmem:[%s2588_s2 + $0x38] sm:$0xff]  }
  0x89   :  { %v97_v7 = vpop.permute.xlu1 %96  ;;  %v92_v8 = vpop.permute.xlu0 %91  ;;  %793 = vmatprep.subr.bf16.mxu1 %v1597_v62  ;;  %1527 = vmatprep.subr.bf16.mxu0 %v1618_v63  ;;  %v171_v62 = vld [vmem:[%s2588_s2 + $0x20] sm:$0xff]  }
  0x8a   :  { %v146_v11 = vmul.f32 %v97_v7, %v34_v3  ;;  %v145_v12 = vmul.f32 %v92_v8, %v33_v4  ;;  %1513 = vmatprep.mubr.bf16.mxu1 %v157_v5 }
  0x8c   :  { %v2023_v15 = vpack.c.bf16 %v146_v11, %v145_v12  ;;  %794 = vmatpush1.bf16.msra.mxu1 %v1595_v6  ;;  %1528 = vmatpush3.bf16.msra.mxu0 %v1618_v63  ;;  %v173_v63 = vld [vmem:[%s2588_s2 + $0x28] sm:$0xff]  }
  0x8d   :  { %v107_v17 = vpop.permute.xlu1 %106  ;;  %v102_v18 = vpop.permute.xlu0 %101  ;;  %795 = vmatprep.subr.bf16.mxu1 %v1600_v9  ;;  %1529 = vmatprep.subr.bf16.mxu0 %v1620_v10 }
  0x8e   :  { %v148_v21 = vmul.f32 %v107_v17, %v36_v13  ;;  %v147_v22 = vmul.f32 %v102_v18, %v35_v14  ;;  %399 = vmatmul.mubr.bf16.gmra.mxu0 %v156_v57  ;;  %v1613_v57 = vld [vmem:[%s2586_s4] ss:$12 sps:$4 sm:$0xff]   ;;  %v213_v18 = vlaneseq }
  0x8f   :  { %1514 = vmatmul.mubr.bf16.gmra.mxu1 %v2023_v15  ;;  %408 = vmatprep.mubr.bf16.mxu0 %v1804_v0 }
  0x90   :  { %v2042_v25 = vpack.c.bf16 %v148_v21, %v147_v22  ;;  %796 = vmatpush1.bf16.msra.mxu1 %v1598_v16  ;;  %1530 = vmatpush3.bf16.msra.mxu0 %v1620_v10 }
  0x91   :  { %v117_v27 = vpop.permute.xlu1 %116  ;;  %v112_v28 = vpop.permute.xlu0 %111  ;;  %797 = vmatprep.subr.bf16.mxu1 %v1603_v19  ;;  %1531 = vmatprep.subr.bf16.mxu0 %v1621_v20 }
  0x92   :  { %v150_v31 = vmul.f32 %v117_v27, %v38_v23  ;;  %v149_v32 = vmul.f32 %v112_v28, %v37_v24  ;;  %1517 = vmatprep.mubr.bf16.mxu1 %v2042_v25  ;;  %v2181_v23 = vshrl.u32 %v213_v18, 7 }
  0x94   :  { %v160_v35 = vpack.c.bf16 %v150_v31, %v149_v32  ;;  %798 = vmatpush1.bf16.msra.mxu1 %v1601_v26  ;;  %1532 = vmatpush3.bf16.msra.mxu0 %v1621_v20  ;;  %v223_v28 = vsub.s32 2, %v2181_v23  ;;  %v215_v32 = vsub.s32 0, %v2181_v23 }
  0x95   :  { %v127_v37 = vpop.permute.xlu1 %126  ;;  %v122_v38 = vpop.permute.xlu0 %121  ;;  %799 = vmatprep.subr.bf16.mxu1 %v1606_v29  ;;  %1533 = vmatprep.subr.bf16.mxu0 %v1623_v30 }
  0x96   :  { %v152_v41 = vmul.f32 %v127_v37, %v40_v33  ;;  %v151_v42 = vmul.f32 %v122_v38, %v39_v34  ;;  %409 = vmatmul.mubr.bf16.gmra.mxu0 %v157_v5  ;;  %v219_v37 = vsub.s32 1, %v2181_v23 }
  0x97   :  { %1518 = vmatmul.mubr.bf16.gmra.mxu1 %v160_v35  ;;  %418 = vmatprep.mubr.bf16.mxu0 %v1804_v0 }
  0x98   :  { %v161_v45 = vpack.c.bf16 %v152_v41, %v151_v42  ;;  %800 = vmatpush1.bf16.msra.mxu1 %v1604_v36  ;;  %1534 = vmatpush3.bf16.msra.mxu0 %v1623_v30  ;;  %v211_v30 = vld [vmem:[%s2589_s5] sm:$0x7] }
  0x99   :  { %v137_v47 = vpop.permute.xlu1 %136  ;;  %v132_v48 = vpop.permute.xlu0 %131  ;;  %801 = vmatprep.subr.bf16.mxu1 %v1609_v39  ;;  %1535 = vmatprep.subr.bf16.mxu0 %v1624_v40  ;;  %v2211_v36 = vrot.slane %v211_v30, %v223_v28 }
  0x9a   :  { %v154_v51 = vmul.f32 %v137_v47, %v42_v43  ;;  %v153_v52 = vmul.f32 %v132_v48, %v41_v44  ;;  %1521 = vmatprep.mubr.bf16.mxu1 %v161_v45 }
  0x9c   :  { %v162_v53 = vpack.c.bf16 %v154_v51, %v153_v52  ;;  %802 = vmatpush1.bf16.msra.mxu1 %v1607_v46  ;;  %1536 = vmatpush3.bf16.msra.mxu0 %v1624_v40  ;;  %v2216_v40 = vrot.slane %v211_v30, %v215_v32 }
  0x9d   :  { %803 = vmatprep.subr.bf16.mxu1 %v1612_v49  ;;  %1537 = vmatprep.subr.bf16.mxu0 %v1626_v50 }
  0x9e   :  { %419 = vmatmul.mubr.bf16.gmra.mxu0 %v2023_v15 }
  0x9f   :  { %1522 = vmatmul.mubr.bf16.gmra.mxu1 %v162_v53  ;;  %428 = vmatprep.mubr.bf16.mxu0 %v1804_v0 }
  0xa0   :  { %804 = vmatpush1.bf16.msra.mxu1 %v1610_v54  ;;  %823 = vmatprep.mubr.bf16.mxu1 %v1804_v0 }
  0xa1   :  { %805 = vmatprep.subr.bf16.mxu1 %v1615_v55  ;;  %1538 = vmatpush3.bf16.msra.mxu0 %v1626_v50 }
  0xa2   :  { %1539 = vmatprep.subr.bf16.mxu0 %v1627_v56 }
  0xa4   :  { %806 = vmatpush1.bf16.msra.mxu1 %v1613_v57 }
  0xa5   :  { %1540 = vmatpush3.bf16.msra.mxu0 %v1627_v56 }
  0xa6   :  { %429 = vmatmul.mubr.bf16.gmra.mxu0 %v2042_v25 }
  0xa7   :  { %824 = vmatmul.mubr.bf16.vlgmr.msra.gmra.mxu1 %v2103_v58  ;;  %438 = vmatprep.mubr.bf16.mxu0 %v1804_v0 }
  0xa8   :  { %833 = vmatprep.mubr.bf16.mxu1 %v1804_v0 }
  0xae   :  { %439 = vmatmul.mubr.bf16.gmra.mxu0 %v160_v35  ;;  %v2207_v35 = vld [vmem:[%s2590_s6] sm:$0x7] }
  0xaf   :  { %834 = vmatmul.mubr.bf16.gmra.mxu1 %v2112_v59  ;;  %448 = vmatprep.mubr.bf16.mxu0 %v1804_v0  ;;  %v2224_v43 = vrot.slane %v2207_v35, %v215_v32  ;;  %v2233_v47 = vrot.slane %v2207_v35, %v219_v37 }
  0xb0   :  { %843 = vmatprep.mubr.bf16.mxu1 %v1804_v0 }
  0xb6   :  { %449 = vmatmul.mubr.bf16.gmra.mxu0 %v161_v45  ;;  %v2228_v45 = vrot.slane %v211_v30, %v219_v37 }
  0xb7   :  { %844 = vmatmul.mubr.bf16.gmra.mxu1 %v2120_v60  ;;  %458 = vmatprep.mubr.bf16.mxu0 %v1804_v0 }
  0xb8   :  { %853 = vmatprep.mubr.bf16.mxu1 %v1804_v0 }
  0xbe   :  { %459 = vmatmul.mubr.bf16.gmra.mxu0 %v162_v53 }
  0xbf   :  { %854 = vmatmul.mubr.bf16.gmra.mxu1 %v2128_v61  ;;  %1541 = vmatprep.mubr.bf16.mxu0 %v2103_v58 }
  0xc0   :  { %863 = vmatprep.mubr.bf16.mxu1 %v1804_v0 }
  0xc6   :  { %1542 = vmatmul.mubr.bf16.vlgmr.msra.gmra.mxu0 %v2112_v59 }
  0xc7   :  { %864 = vmatmul.mubr.bf16.gmra.mxu1 %v171_v62  ;;  %1545 = vmatprep.mubr.bf16.mxu0 %v2120_v60 }
  0xc8   :  { %873 = vmatprep.mubr.bf16.mxu1 %v1804_v0 }
  0xce   :  { %1546 = vmatmul.mubr.bf16.gmra.mxu0 %v2128_v61 }
  0xcf   :  { %874 = vmatmul.mubr.bf16.gmra.mxu1 %v173_v63  ;;  %1549 = vmatprep.mubr.bf16.mxu0 %v171_v62 }
  0xd0   :  { %883 = vmatprep.mubr.bf16.mxu1 %v1804_v0 }
  0xd6   :  { %1550 = vmatmul.mubr.bf16.gmra.mxu0 %v173_v63 }
  0xd7   :  { %884 = vmatmul.mubr.bf16.gmra.mxu1 %v175_v1  ;;  %1553 = vmatprep.mubr.bf16.mxu0 %v175_v1 }
  0xd8   :  { %893 = vmatprep.mubr.bf16.mxu1 %v1804_v0 }
  0xde   :  { %1554 = vmatmul.mubr.bf16.gmra.mxu0 %v177_v2 }
  0xdf   :  { %894 = vmatmul.mubr.bf16.gmra.mxu1 %v177_v2 }
 0x146   :  { %v390_v3 = vpop.f32.mrf.mxu0 }
 0x147   :  { %v2151_v4 = vpop.f32.mrf.mxu1  ;;  %v391_v49 = vadd.f32 %v390_v3, %v2216_v40 }
 0x148   :  { %v392_v5 = vpop.f32.mrf.mxu0 }
 0x149   :  { %v2153_v6 = vpop.f32.mrf.mxu1  ;;  %v393_v53 = vadd.f32 %v392_v5, %v2228_v45 }
 0x14a   :  { %v394_v7 = vpop.f32.mrf.mxu0 }
 0x14b   :  { %v2155_v8 = vpop.f32.mrf.mxu1  ;;  %v395_v62 = vadd.f32 %v394_v7, %v2216_v40 }
 0x14c   :  { %v396_v9 = vpop.f32.mrf.mxu0 }
 0x14d   :  { %v2157_v10 = vpop.f32.mrf.mxu1  ;;  %v397_v18 = vadd.f32 %v396_v9, %v2228_v45 }
 0x14e   :  { %v400_v11 = vpop.f32.mrf.mxu0 }
 0x14f   :  { %v2159_v0 = vpop.f32.mrf.mxu1 }
 0x150   :  { %v2161_v12 = vpop.f32.mrf.mxu0 }
 0x151   :  { %v2163_v13 = vpop.f32.mrf.mxu1  ;;  %v403_v9 = vadd.f32 %v2161_v12, %v2228_v45 }
 0x152   :  { %v2165_v14 = vpop.f32.mrf.mxu0 }
 0x153   :  { %v2167_v15 = vpop.f32.mrf.mxu1 }
 0x154   :  { %v2169_v16 = vpop.f32.mrf.mxu0 }
 0x155   :  { %v2171_v17 = vpop.f32.mrf.mxu1  ;;  %v407_v12 = vadd.f32 %v2169_v16, %v2228_v45 }
 0x156   :  { %v2173_v19 = vpop.f32.mrf.mxu0 }
 0x157   :  { %v2175_v20 = vpop.f32.mrf.mxu1 }
 0x158   :  { %v2177_v21 = vpop.f32.mrf.mxu0 }
 0x159   :  { %v2179_v22 = vpop.f32.mrf.mxu1  ;;  %v413_v16 = vadd.f32 %v2177_v21, %v2228_v45 }
 0x15a   :  { %v2183_v24 = vpop.f32.mrf.mxu0 }
 0x15b   :  { %v2185_v25 = vpop.f32.mrf.mxu1 }
 0x15c   :  { %v2187_v26 = vpop.f32.mrf.mxu0 }
 0x15d   :  { %v2189_v27 = vpop.f32.mrf.mxu1 }
 0x15e   :  { %v2192_v29 = vpop.f32.mrf.mxu0 }
 0x15f   :  { %v2197_v31 = vpop.f32.mrf.mxu1 }
 0x160   :  { %2592 = vst [vmem:[#allocation2_spill] sm:$0xff] %v2197_v31  ;;  %v2200_v33 = vpop.f32.mrf.mxu0 }
 0x161   :  { %v2202_v34 = vpop.f32.mrf.mxu1 }
 0x162   :  { %v2214_v38 = vpop.f32.mrf.mxu0 }
 0x163   :  { %v1524_v39 = vpop.f32.mrf.mxu1 }
 0x164   :  { %v2219_v41 = vadd.f32 %v1524_v39, %v2211_v36  ;;  %v2221_v42 = vpop.f32.mrf.mxu0 }
 0x165   :  { %v2226_v44 = vpop.f32.mrf.mxu1 }
 0x166   :  { %2593 = vst [vmem:[#allocation3_spill] sm:$0xff] %v2219_v41  ;;  %v2230_v46 = vpop.f32.mrf.mxu0 }
 0x167   :  { %v825_v48 = vpop.f32.mrf.mxu1 }
 0x168   :  { %v826_v50 = vadd.f32 %v825_v48, %v2224_v43  ;;  %v2237_v51 = vpop.f32.mrf.mxu0  ;;  %v401_v48 = vadd.f32 %v400_v11, %v2216_v40 }
 0x169   :  { %v827_v52 = vpop.f32.mrf.mxu1 }
 0x16a   :  { %v1001_v54 = vadd.f32 %v826_v50, %v391_v49  ;;  %v828_v55 = vadd.f32 %v827_v52, %v2233_v47  ;;  %v2241_v56 = vpop.f32.mrf.mxu0 }
 0x16b   :  { %v829_v57 = vpop.f32.mrf.mxu1 }
 0x16c   :  { %v1429_v63 = vmul.f32 -1.442695, %v1001_v54  ;;  %v1113_v1 = vadd.f32 %v828_v55, %v393_v53  ;;  %v830_v2 = vadd.f32 %v829_v57, %v2224_v43  ;;  %v2245_v3 = vpop.f32.mrf.mxu0 }
 0x16d   :  { %v831_v30 = vpop.f32.mrf.mxu1  ;;  %v437_v31 = vadd.f32 %v2245_v3, %v2228_v45 }
 0x16e   :  { %1640 = vpow2.f32 %v1429_v63  ;;  %v1445_v32 = vmul.f32 -1.442695, %v1113_v1  ;;  %v1002_v5 = vadd.f32 %v830_v2, %v395_v62  ;;  %v832_v37 = vadd.f32 %v831_v30, %v2233_v47  ;;  %v2249_v39 = vpop.f32.mrf.mxu0 }
 0x16f   :  { %v835_v49 = vpop.f32.mrf.mxu1  ;;  %v405_v1 = vadd.f32 %v2165_v14, %v2216_v40  ;;  %v411_v14 = vadd.f32 %v2173_v19, %v2216_v40 }
 0x170   :  { %1642 = vpow2.f32 %v1445_v32  ;;  %v1430_v7 = vmul.f32 -1.442695, %v1002_v5  ;;  %v1114_v50 = vadd.f32 %v832_v37, %v397_v18  ;;  %v836_v52 = vadd.f32 %v835_v49, %v2224_v43  ;;  %v2253_v53 = vpop.f32.mrf.mxu0 }
 0x171   :  { %v837_v54 = vpop.f32.mrf.mxu1 }
 0x172   :  { %1644 = vpow2.f32 %v1430_v7  ;;  %v1446_v55 = vmul.f32 -1.442695, %v1114_v50  ;;  %v1003_v57 = vadd.f32 %v836_v52, %v401_v48  ;;  %v838_v62 = vadd.f32 %v837_v54, %v2233_v47  ;;  %v2258_v63 = vpop.f32.mrf.mxu0 }
 0x173   :  { %v839_v11 = vpop.f32.mrf.mxu1  ;;  %v445_v3 = vadd.f32 %v2258_v63, %v2216_v40 }
 0x174   :  { %v1431_v2 = vmul.f32 -1.442695, %v1003_v57  ;;  %v1115_v18 = vadd.f32 %v838_v62, %v403_v9  ;;  %v840_v30 = vadd.f32 %v839_v11, %v2224_v43  ;;  %v2263_v32 = vpop.f32.mrf.mxu0  ;;  %1646 = vpow2.f32 %v1446_v55 }
 0x175   :  { %v841_v5 = vpop.f32.mrf.mxu1 }
 0x176   :  { %1648 = vpow2.f32 %v1431_v2  ;;  %v1447_v37 = vmul.f32 -1.442695, %v1115_v18  ;;  %v1004_v48 = vadd.f32 %v840_v30, %v405_v1  ;;  %v842_v49 = vadd.f32 %v841_v5, %v2233_v47  ;;  %v2268_v7 = vpop.f32.mrf.mxu0 }
 0x177   :  { %v845_v50 = vpop.f32.mrf.mxu1 }
 0x178   :  { %v1432_v52 = vmul.f32 -1.442695, %v1004_v48  ;;  %v1116_v9 = vadd.f32 %v842_v49, %v407_v12  ;;  %v846_v54 = vadd.f32 %v845_v50, %v2224_v43  ;;  %v2273_v57 = vpop.f32.mrf.mxu0  ;;  %1650 = vpow2.f32 %v1447_v37 }
 0x179   :  { %v847_v55 = vpop.f32.mrf.mxu1 }
 0x17a   :  { %1652 = vpow2.f32 %v1432_v52  ;;  %v1448_v62 = vmul.f32 -1.442695, %v1116_v9  ;;  %v1005_v11 = vadd.f32 %v846_v54, %v411_v14  ;;  %v848_v1 = vadd.f32 %v847_v55, %v2233_v47  ;;  %v2278_v2 = vpop.f32.mrf.mxu0 }
 0x17b   :  { %v1641_v18 = vpop.eup %1640  ;;  %v849_v5 = vpop.f32.mrf.mxu1  ;;  %v415_v52 = vadd.f32 %v2183_v24, %v2216_v40  ;;  %v417_v9 = vadd.f32 %v2187_v26, %v2228_v45  ;;  %v2301_v26 = vrot.slane %v2207_v35, %v223_v28 }
 0x17c   :  { %v1065_v21 = vadd.f32 1.0, %v1641_v18  ;;  %v1433_v37 = vmul.f32 -1.442695, %v1005_v11  ;;  %v1117_v49 = vadd.f32 %v848_v1, %v413_v16  ;;  %v2284_v50 = vpop.f32.mrf.mxu0  ;;  %1654 = vpow2.f32 %v1448_v62 }
 0x17d   :  { %v1643_v14 = vpop.eup %1642  ;;  %v850_v54 = vadd.f32 %v849_v5, %v2224_v43  ;;  %v851_v55 = vpop.f32.mrf.mxu1  ;;  %v2296_v1 = vadd.f32 %v2151_v4, %v2211_v36  ;;  %v421_v62 = vadd.f32 %v2192_v29, %v2216_v40  ;;  %v2310_v4 = vadd.f32 %v2153_v6, %v2211_v36 }
 0x17e   :  { %1656 = vrcp.f32 %v1065_v21  ;;  %v1177_v12 = vadd.f32 1.0, %v1643_v14  ;;  %v1449_v30 = vmul.f32 -1.442695, %v1117_v49  ;;  %v852_v18 = vadd.f32 %v851_v55, %v2233_v47  ;;  %v2292_v11 = vpop.f32.mrf.mxu0 }
 0x17f   :  { %v1645_v16 = vpop.eup %1644  ;;  %1658 = vpow2.f32 %v1433_v37  ;;  %v1006_v24 = vadd.f32 %v850_v54, %v415_v52  ;;  %v855_v48 = vpop.f32.mrf.mxu1  ;;  %v2314_v37 = vadd.f32 %v2155_v8, %v2211_v36  ;;  %v2318_v29 = vadd.f32 %v2157_v10, %v2211_v36 }
 0x180   :  { %v1066_v5 = vadd.f32 1.0, %v1645_v16  ;;  %v1118_v21 = vadd.f32 %v852_v18, %v417_v9  ;;  %v856_v49 = vadd.f32 %v855_v48, %v2224_v43  ;;  %v2306_v14 = vpop.f32.mrf.mxu0  ;;  %1660 = vpow2.f32 %v1449_v30 }
 0x181   :  { %v1434_v23 = vmul.f32 -1.442695, %v1006_v24  ;;  %v857_v28 = vpop.f32.mrf.mxu1  ;;  %v1647_v35 = vpop.eup %1646  ;;  %1662 = vrcp.f32 %v1177_v12  ;;  %v423_v6 = vadd.f32 %v2200_v33, %v2228_v45  ;;  %v425_v8 = vadd.f32 %v2214_v38, %v2216_v40 }
 0x182   :  { %v1450_v48 = vmul.f32 -1.442695, %v1118_v21  ;;  %v1007_v52 = vadd.f32 %v856_v49, %v421_v62  ;;  %v2320_v9 = vpop.f32.mrf.mxu0  ;;  %v858_v30 = vadd.f32 %v857_v28, %v2233_v47  ;;  %v2332_v24 = vadd.f32 %v2159_v0, %v2211_v36 }
 0x183   :  { %v1649_v54 = vpop.eup %1648  ;;  %1664 = vpow2.f32 %v1434_v23  ;;  %v859_v55 = vpop.f32.mrf.mxu1  ;;  %v1178_v62 = vadd.f32 1.0, %v1647_v35  ;;  %v427_v49 = vadd.f32 %v2221_v42, %v2228_v45  ;;  %v2343_v0 = vadd.f32 %v2167_v15, %v2211_v36 }
 0x184   :  { %1666 = vrcp.f32 %v1066_v5  ;;  %v1067_v18 = vadd.f32 1.0, %v1649_v54  ;;  %v1435_v10 = vmul.f32 -1.442695, %v1007_v52  ;;  %v860_v12 = vadd.f32 %v859_v55, %v2224_v43  ;;  %v2328_v16 = vpop.f32.mrf.mxu0 }
 0x185   :  { %1668 = vpow2.f32 %v1450_v48  ;;  %v1119_v33 = vadd.f32 %v858_v30, %v423_v6  ;;  %v861_v21 = vpop.f32.mrf.mxu1  ;;  %v1651_v38 = vpop.eup %1650  ;;  %v2339_v54 = vadd.f32 %v2163_v13, %v2211_v36  ;;  %v431_v35 = vadd.f32 %v2230_v46, %v2216_v40 }
 0x186   :  { %1670 = vrcp.f32 %v1067_v18  ;;  %v1008_v5 = vadd.f32 %v860_v12, %v425_v8  ;;  %v862_v23 = vadd.f32 %v861_v21, %v2233_v47  ;;  %v1543_v28 = vpop.f32.mrf.mxu0  ;;  %v1179_v18 = vadd.f32 1.0, %v1651_v38 }
 0x187   :  { %v1653_v52 = vpop.eup %1652  ;;  %1672 = vpow2.f32 %v1435_v10  ;;  %v865_v48 = vpop.f32.mrf.mxu1  ;;  %v1451_v6 = vmul.f32 -1.442695, %v1119_v33  ;;  %v433_v15 = vadd.f32 %v2237_v51, %v2228_v45  ;;  %v2354_v33 = vadd.f32 %v2171_v17, %v2211_v36 }
 0x188   :  { %v1068_v42 = vadd.f32 1.0, %v1653_v52  ;;  %v1436_v8 = vmul.f32 -1.442695, %v1008_v5  ;;  %v1120_v30 = vadd.f32 %v862_v23, %v427_v49  ;;  %v938_v55 = vpop.f32.mrf.mxu0  ;;  %1674 = vrcp.f32 %v1178_v62 }
 0x189   :  { %v866_v12 = vadd.f32 %v865_v48, %v2224_v43  ;;  %v867_v13 = vpop.f32.mrf.mxu1  ;;  %v939_v21 = vadd.f32 %v938_v55, %v2301_v26  ;;  %v1655_v19 = vpop.eup %1654  ;;  %v435_v62 = vadd.f32 %v2241_v56, %v2216_v40  ;;  %v441_v56 = vadd.f32 %v2249_v39, %v2216_v40 }
 0x18a   :  { %1676 = vrcp.f32 %v1068_v42  ;;  %v1452_v46 = vmul.f32 -1.442695, %v1120_v30  ;;  %v868_v10 = vadd.f32 %v867_v13, %v2233_v47  ;;  %v1544_v5 = vpop.f32.mrf.mxu0  ;;  %v1180_v30 = vadd.f32 1.0, %v1655_v19 }
 0x18b   :  { %v1657_v52 = vpop.eup %1656  ;;  %1678 = vpow2.f32 %v1436_v8  ;;  %v1009_v38 = vadd.f32 %v866_v12, %v431_v35  ;;  %v869_v49 = vpop.f32.mrf.mxu1  ;;  %v2365_v35 = vadd.f32 %v2253_v53, %v2228_v45  ;;  %v947_v39 = vadd.f32 %v1543_v28, %v2301_v26 }
 0x18c   :  { %v1659_v23 = vpop.eup %1658  ;;  %1680 = vpow2.f32 %v1451_v6  ;;  %v1121_v48 = vadd.f32 %v868_v10, %v433_v15  ;;  %v1225_v51 = vmul.f32 %v1657_v52, %v939_v21  ;;  %v870_v42 = vadd.f32 %v869_v49, %v2224_v43  ;;  %v941_v12 = vpop.f32.mrf.mxu0 }
 0x18d   :  { %1682 = vrcp.f32 %v1179_v18  ;;  %v1069_v55 = vadd.f32 1.0, %v1659_v23  ;;  %v1437_v13 = vmul.f32 -1.442695, %v1009_v38  ;;  %v871_v41 = vpop.f32.mrf.mxu1  ;;  %v1661_v17 = vpop.eup %1660  ;;  %v2380_v23 = vadd.f32 %v2268_v7, %v2216_v40 }
 0x18e   :  { %1684 = vpow2.f32 %v1452_v46  ;;  %v2367_v6 = vpop.eup %1662  ;;  %v1181_v8 = vadd.f32 1.0, %v1661_v17  ;;  %v1453_v19 = vmul.f32 -1.442695, %v1121_v48  ;;  %v1010_v18 = vadd.f32 %v870_v42, %v435_v62  ;;  %v2392_v42 = vpop.f32.mrf.mxu0 }
 0x18f   :  { %1686 = vrcp.f32 %v1069_v55  ;;  %v875_v21 = vpop.f32.mrf.mxu1  ;;  %v1241_v10 = vadd.f32 %v1225_v51, %v2310_v4  ;;  %v2375_v46 = vadd.f32 %v2263_v32, %v2228_v45  ;;  %v872_v62 = vadd.f32 %v871_v41, %v2233_v47 }
 0x190   :  { %v1665_v15 = vpop.eup %1664  ;;  %1688 = vpow2.f32 %v1437_v13  ;;  %v1438_v63 = vmul.f32 -1.442695, %v1010_v18  ;;  %v942_v28 = vadd.f32 %v941_v12, %v2301_v26  ;;  %v2385_v48 = vadd.f32 %v2273_v57, %v2228_v45 }
 0x191   :  { %v1667_v53 = vpop.eup %1666  ;;  %1690 = vrcp.f32 %v1180_v30  ;;  %v1070_v52 = vadd.f32 1.0, %v1665_v15  ;;  %v877_v38 = vpop.f32.mrf.mxu1  ;;  %v2389_v32 = vadd.f32 %v2278_v2, %v2216_v40  ;;  %v876_v41 = vadd.f32 %v875_v21, %v2224_v43 }
 0x192   :  { %v1669_v49 = vpop.eup %1668  ;;  %1692 = vrcp.f32 %v1181_v8  ;;  %v2396_v30 = vadd.f32 %v2284_v50, %v2228_v45  ;;  %v950_v57 = vadd.f32 %v1544_v5, %v2301_v26  ;;  %v1122_v17 = vadd.f32 %v872_v62, %v437_v31 }
 0x193   :  { %v1671_v4 = vpop.eup %1670  ;;  %1694 = vpow2.f32 %v1453_v19  ;;  %v879_v51 = vpop.f32.mrf.mxu1  ;;  %v1182_v18 = vadd.f32 1.0, %v1669_v49  ;;  %v1226_v21 = vmul.f32 %v1667_v53, %v942_v28  ;;  %v2405_v50 = vadd.f32 %v2292_v11, %v2216_v40 }
 0x194   :  { %v1673_v7 = vpop.eup %1672  ;;  %v1227_v55 = vmul.f32 %v1671_v4, %v947_v39  ;;  %1696 = vtanh.f32 %v1241_v10  ;;  %v880_v2 = vadd.f32 %v879_v51, %v2224_v43  ;;  %v2409_v5 = vadd.f32 %v2306_v14, %v2228_v45  ;;  %v954_v10 = vpop.f32.mrf.mxu0 }
 0x195   :  { %1698 = vrcp.f32 %v1070_v52  ;;  %v1071_v13 = vadd.f32 1.0, %v1673_v7  ;;  %v881_v8 = vpop.f32.mrf.mxu1  ;;  %v2400_v19 = vpop.eup %1674  ;;  %v1011_v31 = vadd.f32 %v876_v41, %v441_v56  ;;  %v2413_v62 = vadd.f32 %v2320_v9, %v2216_v40 }
 0x196   :  { %v1243_v12 = vadd.f32 %v1227_v55, %v2296_v1  ;;  %1700 = vpow2.f32 %v1438_v63  ;;  %v878_v53 = vadd.f32 %v877_v38, %v2233_v47  ;;  %v1454_v63 = vmul.f32 -1.442695, %v1122_v17 }
 0x197   :  { %v1677_v15 = vpop.eup %1676  ;;  %1702 = vrcp.f32 %v1071_v13  ;;  %v885_v39 = vpop.f32.mrf.mxu1  ;;  %v1012_v28 = vadd.f32 %v880_v2, %v445_v3  ;;  %v1242_v41 = vadd.f32 %v1226_v21, %v2318_v29  ;;  %v882_v40 = vadd.f32 %v881_v8, %v2233_v47 }
 0x198   :  { %v1679_v52 = vpop.eup %1678  ;;  %1704 = vtanh.f32 %v1243_v12  ;;  %v1228_v1 = vmul.f32 %v1677_v15, %v950_v57  ;;  %v886_v4 = vadd.f32 %v885_v39, %v2224_v43  ;;  %v2424_v38 = vadd.f32 %v2328_v16, %v2228_v45  ;;  %v1548_v57 = vpop.f32.mrf.mxu0 }
 0x199   :  { %v1681_v49 = vpop.eup %1680  ;;  %v1072_v11 = vadd.f32 1.0, %v1679_v52  ;;  %v887_v14 = vpop.f32.mrf.mxu1  ;;  %1706 = vrcp.f32 %v1182_v18  ;;  %v1439_v7 = vmul.f32 -1.442695, %v1011_v31  ;;  %v955_v3 = vadd.f32 %v954_v10, %v2301_v26 }
 0x19a   :  { %v2417_v51 = vpop.eup %1682  ;;  %v1244_v56 = vadd.f32 %v1228_v1, %v2314_v37  ;;  %v2594_v17 = vunpack.c.l.bf16 %v2103_v58  ;;  %v1183_v2 = vadd.f32 1.0, %v1681_v49  ;;  %v1123_v29 = vadd.f32 %v878_v53, %v2365_v35  ;;  %v957_v1 = vpop.f32.mrf.mxu0 }
 0x19b   :  { %v1685_v9 = vpop.eup %1684  ;;  %1708 = vrcp.f32 %v1072_v11  ;;  %v889_v55 = vpop.f32.mrf.mxu1  ;;  %v1273_v18 = vsub.f32 1.0, %v2367_v6  ;;  %v1440_v45 = vmul.f32 -1.442695, %v1012_v28  ;;  %v1013_v16 = vadd.f32 %v886_v4, %v2380_v23 }
 0x19c   :  { %v1687_v13 = vpop.eup %1686  ;;  %v1321_v37 = vmul.f32 %v2367_v6, %v2594_v17  ;;  %1710 = vtanh.f32 %v1244_v56  ;;  %v1184_v15 = vadd.f32 1.0, %v1685_v9  ;;  %v1124_v39 = vadd.f32 %v882_v40, %v2375_v46  ;;  %v2449_v40 = vpop.f32.mrf.mxu0 }
 0x19d   :  { %v1689_v8 = vpop.eup %1688  ;;  %1712 = vpow2.f32 %v1454_v63  ;;  %v891_v12 = vpop.f32.mrf.mxu1  ;;  %v888_v35 = vadd.f32 %v887_v14, %v2233_v47  ;;  %v1229_v52 = vmul.f32 %v1687_v13, %v955_v3  ;;  %v890_v6 = vadd.f32 %v889_v55, %v2224_v43 }
 0x19e   :  { %v2433_v21 = vpop.eup %1690  ;;  %v1073_v31 = vadd.f32 1.0, %v1689_v8  ;;  %1714 = vtanh.f32 %v1242_v41  ;;  %v2595_v23 = vunpack.c.h.bf16 %v2103_v58  ;;  %v1455_v63 = vmul.f32 -1.442695, %v1123_v29 }
 0x19f   :  { %v2436_v10 = vpop.eup %1692  ;;  %1716 = vpow2.f32 %v1439_v7  ;;  %v895_v53 = vpop.f32.mrf.mxu1  ;;  %v963_v46 = vadd.f32 %v2392_v42, %v2301_v26  ;;  %v1275_v4 = vsub.f32 1.0, %v2417_v51  ;;  %v1274_v14 = vsub.f32 1.0, %v2400_v19 }
 0x1a0   :  { %v1695_v49 = vpop.eup %1694  ;;  %v2443_v11 = vmul.f32 %v2400_v19, %v2595_v23  ;;  %1718 = vrcp.f32 %v1183_v2  ;;  %v1441_v56 = vmul.f32 -1.442695, %v1013_v16  ;;  %v1456_v7 = vmul.f32 -1.442695, %v1124_v39  ;;  %v970_v39 = vpop.f32.mrf.mxu0 }
 0x1a1   :  { %v1697_v28 = vpop.eup %1696  ;;  %1720 = vrcp.f32 %v1073_v31  ;;  %v897_v41 = vpop.f32.mrf.mxu1  ;;  %v958_v3 = vadd.f32 %v957_v1, %v2301_v26  ;;  %v1125_v42 = vadd.f32 %v888_v35, %v2385_v48  ;;  %v1245_v13 = vadd.f32 %v1229_v52, %v2339_v54 }
 0x1a2   :  { %v1699_v9 = vpop.eup %1698  ;;  %1722 = vrcp.f32 %v1184_v15  ;;  %v1289_v58 = vmul.f32 %v1697_v28, %v1273_v18  ;;  %v1014_v17 = vadd.f32 %v890_v6, %v2389_v32  ;;  %v896_v16 = vadd.f32 %v895_v53, %v2224_v43 }
 0x1a3   :  { %v1701_v55 = vpop.eup %1700  ;;  %1724 = vpow2.f32 %v1440_v45  ;;  %v899_v2 = vpop.f32.mrf.mxu1  ;;  %v2596_v18 = vunpack.c.l.bf16 %v2112_v59  ;;  %v966_v48 = vadd.f32 %v1548_v57, %v2301_v26  ;;  %v1276_v32 = vsub.f32 1.0, %v2433_v21 }
 0x1a4   :  { %v1703_v19 = vpop.eup %1702  ;;  %v1337_v29 = vadd.f32 %v1321_v37, %v1289_v58  ;;  %v1074_v8 = vadd.f32 1.0, %v1701_v55  ;;  %1726 = vpow2.f32 %v1455_v63  ;;  %v1230_v37 = vmul.f32 %v1699_v9, %v958_v3  ;;  %v2472_v58 = vpop.f32.mrf.mxu0 }
 0x1a5   :  { %v1705_v15 = vpop.eup %1704  ;;  %v1323_v31 = vmul.f32 %v2417_v51, %v2596_v18  ;;  %1728 = vpow2.f32 %v1441_v56  ;;  %v1231_v45 = vmul.f32 %v1703_v19, %v963_v46  ;;  %v1442_v51 = vmul.f32 -1.442695, %v1014_v17  ;;  %v901_v1 = vpop.f32.mrf.mxu1 }
 0x1a6   :  { %v1291_v54 = vmul.f32 %v1705_v15, %v1275_v4  ;;  %1353 = vst [vmem:[%s2591_s7] sm:$0xff] %v1337_v29  ;;  %1730 = vrcp.f32 %v1074_v8  ;;  %v2464_v35 = vpop.eup %1706  ;;  %v892_v6 = vadd.f32 %v891_v12, %v2233_v47  ;;  %v1457_v23 = vmul.f32 -1.442695, %v1125_v42 }
 0x1a7   :  { %1732 = vpow2.f32 %v1456_v7  ;;  %v1247_v52 = vadd.f32 %v1231_v45, %v2332_v24  ;;  %v1015_v63 = vadd.f32 %v896_v16, %v2405_v50  ;;  %v2597_v28 = vunpack.c.h.bf16 %v2112_v59 }
 0x1a8   :  { %v1709_v57 = vpop.eup %1708  ;;  %v1339_v53 = vadd.f32 %v1323_v31, %v1291_v54  ;;  %1734 = vtanh.f32 %v1245_v13  ;;  %v1185_v56 = vadd.f32 1.0, %v1695_v49  ;;  %v1246_v7 = vadd.f32 %v1230_v37, %v2354_v33 }
 0x1a9   :  { %v1711_v46 = vpop.eup %1710  ;;  %v1324_v4 = vmul.f32 %v2433_v21, %v2597_v28  ;;  %1736 = vtanh.f32 %v1247_v52  ;;  %v1232_v9 = vmul.f32 %v1709_v57, %v966_v48  ;;  %v900_v50 = vadd.f32 %v899_v2, %v2224_v43  ;;  %v973_v2 = vpop.f32.mrf.mxu0 }
 0x1aa   :  { %v1713_v24 = vpop.eup %1712  ;;  %1355 = vst [vmem:[%s2591_s7 + $0x10] sm:$0xff] %v1339_v53  ;;  %v1292_v12 = vmul.f32 %v1711_v46, %v1276_v32  ;;  %v902_v3 = vadd.f32 %v901_v1, %v2233_v47  ;;  %1738 = vpow2.f32 %v1442_v51  ;;  %v1126_v49 = vadd.f32 %v892_v6, %v2396_v30 }
 0x1ab   :  { %v1715_v59 = vpop.eup %1714  ;;  %v1248_v21 = vadd.f32 %v1232_v9, %v2343_v0  ;;  %v898_v55 = vadd.f32 %v897_v41, %v2233_v47  ;;  %1740 = vpow2.f32 %v1457_v23  ;;  %v1443_v19 = vmul.f32 -1.442695, %v1015_v63  ;;  %v2506_v9 = vpop.f32.mrf.mxu0 }
 0x1ac   :  { %v1717_v42 = vpop.eup %1716  ;;  %v1340_v13 = vadd.f32 %v1324_v4, %v1292_v12  ;;  %v1290_v17 = vmul.f32 %v1715_v59, %v1274_v14  ;;  %v1128_v43 = vadd.f32 %v902_v3, %v2424_v38  ;;  %v971_v33 = vadd.f32 %v970_v39, %v2301_v26 }
 0x1ad   :  { %v1719_v29 = vpop.eup %1718  ;;  %v1075_v8 = vadd.f32 1.0, %v1717_v42  ;;  %1742 = vtanh.f32 %v1248_v21  ;;  %v1186_v0 = vadd.f32 1.0, %v1713_v24  ;;  %v1016_v30 = vadd.f32 %v900_v50, %v2413_v62 }
 0x1ae   :  { %v1721_v16 = vpop.eup %1720  ;;  %1356 = vst [vmem:[%s2591_s7 + $0x18] sm:$0xff] %v1340_v13  ;;  %v1338_v47 = vadd.f32 %v2443_v11, %v1290_v17  ;;  %1744 = vtanh.f32 %v1246_v7  ;;  %v1127_v41 = vadd.f32 %v898_v55, %v2409_v5  ;;  %v1458_v15 = vmul.f32 -1.442695, %v1126_v49  ;;  %v986_v13 = vpop.f32.mrf.mxu0 }
 0x1af   :  { %v2490_v14 = vpop.eup %1722  ;;  %1746 = vrcp.f32 %v1075_v8  ;;  %v974_v18 = vadd.f32 %v973_v2, %v2301_v26  ;;  %v1309_v11 = vunpack.c.l.bf16 %v2120_v60  ;;  %v1233_v62 = vmul.f32 %v1721_v16, %v971_v33 }
 0x1b0   :  { %v1725_v38 = vpop.eup %1724  ;;  %1354 = vst [vmem:[%s2591_s7 + $0x8] sm:$0xff] %v1338_v47  ;;  %1748 = vpow2.f32 %v1443_v19  ;;  %v1311_v39 = vunpack.c.l.bf16 %v2128_v61  ;;  %v536_v5 = vadd.f32 %v2179_v22, %v2211_v36  ;;  %v1444_v54 = vmul.f32 -1.442695, %v1016_v30 }
 0x1b1   :  { %v1727_v31 = vpop.eup %1726  ;;  %1750 = vrcp.f32 %v1185_v56  ;;  %v1076_v45 = vadd.f32 1.0, %v1725_v38  ;;  %v539_v37 = vadd.f32 %v2189_v27, %v2211_v36  ;;  %v1459_v51 = vmul.f32 -1.442695, %v1127_v41 }
 0x1b2   :  { %v1729_v48 = vpop.eup %1728  ;;  %1752 = vrcp.f32 %v1186_v0  ;;  %v1277_v1 = vsub.f32 1.0, %v2436_v10  ;;  %v1460_v57 = vmul.f32 -1.442695, %v1128_v43  ;;  %v1310_v63 = vunpack.c.h.bf16 %v2120_v60 }
 0x1b3   :  { %v1731_v32 = vpop.eup %1730  ;;  %1754 = vrcp.f32 %v1076_v45  ;;  %v1077_v52 = vadd.f32 1.0, %v1729_v48  ;;  %v1279_v22 = vsub.f32 1.0, %v1719_v29  ;;  %v1249_v46 = vadd.f32 %v1233_v62, %v536_v5 }
 0x1b4   :  { %v1733_v6 = vpop.eup %1732  ;;  %1756 = vpow2.f32 %v1458_v15  ;;  %v1234_v53 = vmul.f32 %v1731_v32, %v974_v18  ;;  %v1325_v4 = vmul.f32 %v2436_v10, %v1309_v11  ;;  %v1312_v24 = vunpack.c.h.bf16 %v2128_v61  ;;  %v2525_v15 = vpop.f32.mrf.mxu0 }
 0x1b5   :  { %v1735_v23 = vpop.eup %1734  ;;  %1758 = vrcp.f32 %v1077_v52  ;;  %v1327_v12 = vmul.f32 %v1719_v29, %v1311_v39  ;;  %v1280_v60 = vsub.f32 1.0, %v2490_v14  ;;  %v979_v59 = vadd.f32 %v2449_v40, %v2301_v26  ;;  %v1800_v39 = vld [vmem:[%s2588_s2 + $0x20] sm:$0xff]  }
 0x1b6   :  { %v1737_v28 = vpop.eup %1736  ;;  %v1293_v56 = vmul.f32 %v1735_v23, %v1277_v1  ;;  %1760 = vpow2.f32 %v1444_v54  ;;  %v1250_v27 = vadd.f32 %v1234_v53, %v539_v37  ;;  %v1187_v10 = vadd.f32 1.0, %v1727_v31  ;;  %v989_v54 = vpop.f32.mrf.mxu0 }
 0x1b7   :  { %v1295_v7 = vmul.f32 %v1737_v28, %v1279_v22  ;;  %1762 = vpow2.f32 %v1459_v51  ;;  %v1739_v50 = vpop.eup %1738  ;;  %v1278_v61 = vsub.f32 1.0, %v2464_v35  ;;  %v1328_v19 = vmul.f32 %v2490_v14, %v1312_v24 }
 0x1b8   :  { %v1341_v3 = vadd.f32 %v1325_v4, %v1293_v56  ;;  %1764 = vpow2.f32 %v1460_v57  ;;  %v1741_v21 = vpop.eup %1740  ;;  %v1078_v55 = vadd.f32 1.0, %v1739_v50  ;;  %v1188_v29 = vadd.f32 1.0, %v1733_v6 }
 0x1b9   :  { %v1343_v49 = vadd.f32 %v1327_v12, %v1295_v7  ;;  %1766 = vtanh.f32 %v1249_v46  ;;  %v544_v43 = vadd.f32 %v2175_v20, %v2211_v36  ;;  %v1326_v33 = vmul.f32 %v2464_v35, %v1310_v63 }
 0x1ba   :  { %v1743_v42 = vpop.eup %1742  ;;  %1357 = vst [vmem:[%s2591_s7 + $0x20] sm:$0xff] %v1341_v3  ;;  %1768 = vtanh.f32 %v1250_v27  ;;  %v982_v30 = vadd.f32 %v2472_v58, %v2301_v26  ;;  %v1189_v31 = vadd.f32 1.0, %v1741_v21  ;;  %v987_v35 = vadd.f32 %v986_v13, %v2301_v26 }
 0x1bb   :  { %v1745_v17 = vpop.eup %1744  ;;  %1359 = vst [vmem:[%s2591_s7 + $0x30] sm:$0xff] %v1343_v49  ;;  %1770 = vrcp.f32 %v1078_v55  ;;  %v1296_v40 = vmul.f32 %v1743_v42, %v1280_v60  ;;  %v547_v45 = vadd.f32 %v2185_v25, %v2211_v36  ;;  %v1313_v5 = vunpack.c.l.bf16 %v1800_v39  ;;  %v1801_v49 = vld [vmem:[%s2588_s2 + $0x28] sm:$0xff]  }
 0x1bc   :  { %v1747_v8 = vpop.eup %1746  ;;  %v1294_v2 = vmul.f32 %v1745_v17, %v1278_v61  ;;  %1772 = vrcp.f32 %v1187_v10  ;;  %v552_v37 = vadd.f32 %v2202_v34, %v2211_v36  ;;  %v1314_v1 = vunpack.c.h.bf16 %v1800_v39 }
 0x1bd   :  { %v1749_v16 = vpop.eup %1748  ;;  %v1344_v0 = vadd.f32 %v1328_v19, %v1296_v40  ;;  %v1235_v47 = vmul.f32 %v1747_v8, %v979_v59  ;;  %1774 = vrcp.f32 %v1188_v29  ;;  %v990_v22 = vadd.f32 %v989_v54, %v2301_v26  ;;  %v2598_v29 = vld [vmem:[#allocation2_spill] sm:$0xff] }
 0x1be   :  { %v1751_v14 = vpop.eup %1750  ;;  %v1342_v41 = vadd.f32 %v1326_v33, %v1294_v2  ;;  %v1079_v38 = vadd.f32 1.0, %v1749_v16  ;;  %v555_v50 = vadd.f32 %v2226_v44, %v2211_v36  ;;  %v1315_v55 = vunpack.c.l.bf16 %v1801_v49 }
 0x1bf   :  { %v1753_v18 = vpop.eup %1752  ;;  %1360 = vst [vmem:[%s2591_s7 + $0x38] sm:$0xff] %v1344_v0  ;;  %v1251_v20 = vadd.f32 %v1235_v47, %v544_v43  ;;  %v1281_v25 = vsub.f32 1.0, %v1751_v14  ;;  %v1329_v27 = vmul.f32 %v1751_v14, %v1313_v5  ;;  %v995_v44 = vadd.f32 %v2506_v9, %v2301_v26  ;;  %v1802_v47 = vld [vmem:[%s2588_s2 + $0x30] sm:$0xff]  }
 0x1c0   :  { %v1755_v11 = vpop.eup %1754  ;;  %1358 = vst [vmem:[%s2591_s7 + $0x28] sm:$0xff] %v1342_v41  ;;  %1776 = vrcp.f32 %v1079_v38  ;;  %v1282_v4 = vsub.f32 1.0, %v1753_v18  ;;  %v1330_v12 = vmul.f32 %v1753_v18, %v1314_v1  ;;  %v560_v40 = vadd.f32 %v2598_v29, %v2211_v36  ;;  %v1803_v38 = vld [vmem:[%s2588_s2 + $0x38] sm:$0xff]  }
 0x1c1   :  { %v1757_v58 = vpop.eup %1756  ;;  %1778 = vtanh.f32 %v1251_v20  ;;  %v1236_v62 = vmul.f32 %v1755_v11, %v982_v30  ;;  %v1316_v43 = vunpack.c.h.bf16 %v1801_v49  ;;  %v1317_v30 = vunpack.c.l.bf16 %v1802_v47 }
 0x1c2   :  { %v1759_v48 = vpop.eup %1758  ;;  %1780 = vrcp.f32 %v1189_v31  ;;  %v1190_v23 = vadd.f32 1.0, %v1757_v58  ;;  %v1320_v36 = vunpack.c.h.bf16 %v1803_v38  ;;  %v998_v18 = vadd.f32 %v2525_v15, %v2301_v26 }
 0x1c3   :  { %v1761_v32 = vpop.eup %1760  ;;  %v1252_v52 = vadd.f32 %v1236_v62, %v547_v45  ;;  %v1237_v51 = vmul.f32 %v1759_v48, %v987_v35 }
 0x1c4   :  { %v1763_v6 = vpop.eup %1762  ;;  %v1080_v57 = vadd.f32 1.0, %v1761_v32 }
 0x1c5   :  { %v1765_v53 = vpop.eup %1764  ;;  %1782 = vtanh.f32 %v1252_v52  ;;  %v1253_v63 = vadd.f32 %v1237_v51, %v552_v37  ;;  %v1191_v21 = vadd.f32 1.0, %v1763_v6  ;;  %v2599_v37 = vld [vmem:[#allocation3_spill] sm:$0xff]  ;;  %v1318_v51 = vunpack.c.h.bf16 %v1802_v47 }
 0x1c6   :  { %v1767_v46 = vpop.eup %1766  ;;  %1784 = vrcp.f32 %v1080_v57  ;;  %v1192_v28 = vadd.f32 1.0, %v1765_v53  ;;  %v1319_v53 = vunpack.c.l.bf16 %v1803_v38 }
 0x1c7   :  { %v1769_v56 = vpop.eup %1768  ;;  %v1297_v34 = vmul.f32 %v1767_v46, %v1281_v25  ;;  %1786 = vtanh.f32 %v1253_v63 }
 0x1c8   :  { %v1771_v24 = vpop.eup %1770  ;;  %1788 = vrcp.f32 %v1192_v28  ;;  %v1298_v7 = vmul.f32 %v1769_v56, %v1282_v4 }
 0x1c9   :  { %1790 = vrcp.f32 %v1190_v23  ;;  %v1345_v3 = vadd.f32 %v1329_v27, %v1297_v34  ;;  %v1238_v60 = vmul.f32 %v1771_v24, %v990_v22  ;;  %v1773_v59 = vpop.eup %1772 }
 0x1ca   :  { %v1346_v10 = vadd.f32 %v1330_v12, %v1298_v7  ;;  %v1775_v61 = vpop.eup %1774  ;;  %v1283_v17 = vsub.f32 1.0, %v1773_v59  ;;  %v1331_v33 = vmul.f32 %v1773_v59, %v1315_v55 }
 0x1cb   :  { %1361 = vst [vmem:[%s2591_s7 + $0x40] sm:$0xff] %v1345_v3  ;;  %v1254_v42 = vadd.f32 %v1238_v60, %v555_v50  ;;  %v1284_v14 = vsub.f32 1.0, %v1775_v61  ;;  %v1332_v20 = vmul.f32 %v1775_v61, %v1316_v43 }
 0x1cc   :  { %1362 = vst [vmem:[%s2591_s7 + $0x48] sm:$0xff] %v1346_v10 }
 0x1cd   :  { %v1777_v13 = vpop.eup %1776  ;;  %1792 = vtanh.f32 %v1254_v42 }
 0x1ce   :  { %v1779_v19 = vpop.eup %1778  ;;  %1794 = vrcp.f32 %v1191_v21  ;;  %v1239_v8 = vmul.f32 %v1777_v13, %v995_v44 }
 0x1cf   :  { %v1299_v2 = vmul.f32 %v1779_v19, %v1283_v17  ;;  %v1781_v16 = vpop.eup %1780 }
 0x1d0   :  { %v1255_v0 = vadd.f32 %v1239_v8, %v560_v40  ;;  %v1285_v11 = vsub.f32 1.0, %v1781_v16  ;;  %v1333_v48 = vmul.f32 %v1781_v16, %v1317_v30 }
 0x1d1   :  { %v1347_v9 = vadd.f32 %v1331_v33, %v1299_v2 }
 0x1d2   :  { %v1783_v41 = vpop.eup %1782  ;;  %1796 = vtanh.f32 %v1255_v0 }
 0x1d3   :  { %v1785_v31 = vpop.eup %1784  ;;  %1363 = vst [vmem:[%s2591_s7 + $0x50] sm:$0xff] %v1347_v9  ;;  %v1300_v35 = vmul.f32 %v1783_v41, %v1284_v14 }
 0x1d4   :  { %v1787_v58 = vpop.eup %1786  ;;  %v1240_v45 = vmul.f32 %v1785_v31, %v998_v18 }
 0x1d5   :  { %v1789_v62 = vpop.eup %1788  ;;  %v1348_v39 = vadd.f32 %v1332_v20, %v1300_v35  ;;  %v1301_v5 = vmul.f32 %v1787_v58, %v1285_v11 }
 0x1d6   :  { %v1791_v54 = vpop.eup %1790  ;;  %v1336_v32 = vmul.f32 %v1789_v62, %v1320_v36  ;;  %v1256_v52 = vadd.f32 %v1240_v45, %v2599_v37  ;;  %v1288_v56 = vsub.f32 1.0, %v1789_v62 }
 0x1d7   :  { %1364 = vst [vmem:[%s2591_s7 + $0x58] sm:$0xff] %v1348_v39  ;;  %v1349_v26 = vadd.f32 %v1333_v48, %v1301_v5  ;;  %v1286_v15 = vsub.f32 1.0, %v1791_v54  ;;  %v1334_v57 = vmul.f32 %v1791_v54, %v1318_v51 }
 0x1d8   :  { %1798 = vtanh.f32 %v1256_v52 }
 0x1d9   :  { %1365 = vst [vmem:[%s2591_s7 + $0x60] sm:$0xff] %v1349_v26 }
 0x1da   :  { %v1793_v6 = vpop.eup %1792 }
 0x1db   :  { %v1795_v1 = vpop.eup %1794  ;;  %v1302_v25 = vmul.f32 %v1793_v6, %v1286_v15 }
 0x1dc   :  { %v1287_v63 = vsub.f32 1.0, %v1795_v1  ;;  %v1335_v46 = vmul.f32 %v1795_v1, %v1319_v53 }
 0x1dd   :  { %v1350_v23 = vadd.f32 %v1334_v57, %v1302_v25 }
 0x1df   :  { %v1797_v22 = vpop.eup %1796  ;;  %1366 = vst [vmem:[%s2591_s7 + $0x68] sm:$0xff] %v1350_v23 }
 0x1e0   :  { %v1303_v28 = vmul.f32 %v1797_v22, %v1287_v63 }
 0x1e2   :  { %v1351_v4 = vadd.f32 %v1335_v46, %v1303_v28 }
 0x1e4   :  { %1367 = vst [vmem:[%s2591_s7 + $0x70] sm:$0xff] %v1351_v4 }
 0x1e5   :  { %v1799_v27 = vpop.eup %1798 }
 0x1e6   :  { %v1304_v34 = vmul.f32 %v1799_v27, %v1288_v56 }
 0x1e8   :  { %v1352_v24 = vadd.f32 %v1336_v32, %v1304_v34 }
 0x1ea   :  { %1368 = vst [vmem:[%s2591_s7 + $0x78] sm:$0xff] %v1352_v24 }

// kernel: evolve_gcn_h_forward.5
= control target key start
LH: loop header
LB: loop body
LE: loop exit
PB: predicated region body
PF: predicated region fallthrough
CT: control target
= control target key end

     0   :  { %s692_s1 = inlined_call_operand.vmem [shape: bf16[128,128], index: 1, kind: input, shape index: {}]   ;;  %s693_s0 = inlined_call_operand.vmem [shape: bf16[32,128], index: 0, kind: input, shape index: {}]   ;;  %s694_s2 = inlined_call_operand.vmem [shape: bf16[128,128], index: 2, kind: input, shape index: {}]   ;;  %s695_s3 = inlined_call_operand.vmem [shape: bf16[128,128], index: 3, kind: input, shape index: {}]   ;;  %s696_s4 = inlined_call_operand.vmem [shape: f32[1,128], index: 4, kind: input, shape index: {}]   ;;  %s697_s5 = inlined_call_operand.vmem [shape: f32[32,128], index: 5, kind: output, shape index: {}]  }
   0x1   :  { %v543_v0 = vld [vmem:[%s692_s1 + $0x38] sm:$0xff]   ;;  %v544_v1 = vld [vmem:[%s692_s1 + $0x30] sm:$0xff]   ;;  %v545_v2 = vld [vmem:[%s692_s1 + $0x28] sm:$0xff]  }
   0x2   :  { %483 = vmatprep.subr.bf16.mxu0 %v543_v0  ;;  %v546_v3 = vld [vmem:[%s692_s1 + $0x20] sm:$0xff]   ;;  %v553_v5 = vld [vmem:[%s694_s2 + $0x38] sm:$0xff]   ;;  %v554_v6 = vld [vmem:[%s694_s2 + $0x30] sm:$0xff]  }
   0x3   :  { %484 = vmatpush3.bf16.msra.mxu0 %v543_v0  ;;  %v551_v4 = vld [vmem:[%s693_s0] sm:$0xff]   ;;  %v547_v7 = vld [vmem:[%s692_s1 + $0x18] sm:$0xff]   ;;  %503 = vmatprep.subr.bf16.mxu1 %v553_v5  ;;  %v555_v8 = vld [vmem:[%s694_s2 + $0x28] sm:$0xff]  }
   0x4   :  { %485 = vmatprep.subr.bf16.mxu0 %v544_v1  ;;  %499 = vmatprep.mubr.bf16.mxu0 %v551_v4  ;;  %v548_v9 = vld [vmem:[%s692_s1 + $0x10] sm:$0xff]   ;;  %v556_v10 = vld [vmem:[%s694_s2 + $0x20] sm:$0xff]   ;;  %v549_v11 = vld [vmem:[%s692_s1 + $0x8] sm:$0xff]  }
   0x5   :  { %504 = vmatpush3.bf16.msra.mxu1 %v553_v5  ;;  %v557_v12 = vld [vmem:[%s694_s2 + $0x18] sm:$0xff]   ;;  %v550_v13 = vld [vmem:[%s692_s1] sm:$0xff]   ;;  %v558_v14 = vld [vmem:[%s694_s2 + $0x10] sm:$0xff]  }
   0x6   :  { %505 = vmatprep.subr.bf16.mxu1 %v554_v6  ;;  %v552_v15 = vld [vmem:[%s693_s0 + $0x8] sm:$0xff]   ;;  %v560_v17 = vld [vmem:[%s694_s2] sm:$0xff]   ;;  %v561_v18 = vld [vmem:[%s695_s3 + $0x38] sm:$0xff]  }
   0x7   :  { %486 = vmatpush3.bf16.msra.mxu0 %v544_v1  ;;  %v559_v16 = vld [vmem:[%s694_s2 + $0x8] sm:$0xff]   ;;  %v562_v19 = vld [vmem:[%s695_s3 + $0x30] sm:$0xff]   ;;  %v564_v21 = vld [vmem:[%s695_s3 + $0x20] sm:$0xff]  }
   0x8   :  { %487 = vmatprep.subr.bf16.mxu0 %v545_v2  ;;  %v563_v20 = vld [vmem:[%s695_s3 + $0x28] sm:$0xff]   ;;  %v565_v22 = vld [vmem:[%s695_s3 + $0x18] sm:$0xff]   ;;  %v566_v29 = vld [vmem:[%s695_s3 + $0x10] sm:$0xff]  }
   0x9   :  { %506 = vmatpush3.bf16.msra.mxu1 %v554_v6  ;;  %v567_v30 = vld [vmem:[%s695_s3 + $0x8] sm:$0xff]   ;;  %v568_v31 = vld [vmem:[%s695_s3] sm:$0xff]  }
   0xa   :  { %507 = vmatprep.subr.bf16.mxu1 %v555_v8  ;;  %v444_v42 = vld [vmem:[%s696_s4] ss:$0 sm:$0xff] }
   0xb   :  { %488 = vmatpush3.bf16.msra.mxu0 %v545_v2 }
   0xc   :  { %489 = vmatprep.subr.bf16.mxu0 %v546_v3 }
   0xd   :  { %508 = vmatpush3.bf16.msra.mxu1 %v555_v8 }
   0xe   :  { %509 = vmatprep.subr.bf16.mxu1 %v556_v10 }
   0xf   :  { %490 = vmatpush3.bf16.msra.mxu0 %v546_v3 }
  0x10   :  { %491 = vmatprep.subr.bf16.mxu0 %v547_v7 }
  0x11   :  { %510 = vmatpush3.bf16.msra.mxu1 %v556_v10 }
  0x12   :  { %511 = vmatprep.subr.bf16.mxu1 %v557_v12 }
  0x13   :  { %492 = vmatpush3.bf16.msra.mxu0 %v547_v7 }
  0x14   :  { %493 = vmatprep.subr.bf16.mxu0 %v548_v9 }
  0x15   :  { %512 = vmatpush3.bf16.msra.mxu1 %v557_v12 }
  0x16   :  { %513 = vmatprep.subr.bf16.mxu1 %v558_v14 }
  0x17   :  { %494 = vmatpush3.bf16.msra.mxu0 %v548_v9 }
  0x18   :  { %495 = vmatprep.subr.bf16.mxu0 %v549_v11 }
  0x19   :  { %514 = vmatpush3.bf16.msra.mxu1 %v558_v14 }
  0x1a   :  { %515 = vmatprep.subr.bf16.mxu1 %v559_v16 }
  0x1b   :  { %496 = vmatpush3.bf16.msra.mxu0 %v549_v11 }
  0x1c   :  { %497 = vmatprep.subr.bf16.mxu0 %v550_v13 }
  0x1d   :  { %516 = vmatpush3.bf16.msra.mxu1 %v559_v16 }
  0x1e   :  { %517 = vmatprep.subr.bf16.mxu1 %v560_v17 }
  0x1f   :  { %498 = vmatpush3.bf16.msra.mxu0 %v550_v13 }
  0x20   :  { %523 = vmatprep.subr.bf16.mxu0 %v561_v18 }
  0x21   :  { %518 = vmatpush3.bf16.msra.mxu1 %v560_v17 }
  0x22   :  { %500 = vmatmul.mubr.bf16.vlgmr.msra.gmra.mxu0 %v552_v15 }
  0x23   :  { %524 = vmatpush3.bf16.msra.mxu0 %v561_v18 }
  0x24   :  { %525 = vmatprep.subr.bf16.mxu0 %v562_v19 }
  0x27   :  { %526 = vmatpush3.bf16.msra.mxu0 %v562_v19 }
  0x28   :  { %527 = vmatprep.subr.bf16.mxu0 %v563_v20 }
  0x2b   :  { %528 = vmatpush3.bf16.msra.mxu0 %v563_v20 }
  0x2c   :  { %529 = vmatprep.subr.bf16.mxu0 %v564_v21 }
  0x2f   :  { %530 = vmatpush3.bf16.msra.mxu0 %v564_v21 }
  0x30   :  { %531 = vmatprep.subr.bf16.mxu0 %v565_v22 }
  0x33   :  { %532 = vmatpush3.bf16.msra.mxu0 %v565_v22 }
  0x34   :  { %533 = vmatprep.subr.bf16.mxu0 %v566_v29 }
  0x37   :  { %534 = vmatpush3.bf16.msra.mxu0 %v566_v29 }
  0x38   :  { %535 = vmatprep.subr.bf16.mxu0 %v567_v30 }
  0x3b   :  { %536 = vmatpush3.bf16.msra.mxu0 %v567_v30 }
  0x3c   :  { %537 = vmatprep.subr.bf16.mxu0 %v568_v31 }
  0x3f   :  { %538 = vmatpush3.bf16.msra.mxu0 %v568_v31 }
  0xe2   :  { %v501_v23 = vpop.f32.mrf.mxu0 }
  0xe4   :  { %v147_v24 = vpop.f32.mrf.mxu0 }
  0xe6   :  { %v502_v25 = vpop.f32.mrf.mxu0 }
  0xe7   :  { %v178_v28 = vpack.c.bf16 %v502_v25, %v501_v23 }
  0xe8   :  { %v150_v26 = vpop.f32.mrf.mxu0 }
  0xe9   :  { %v177_v27 = vpack.c.bf16 %v150_v26, %v147_v24 }
  0xeb   :  { %519 = vmatprep.mubr.bf16.mxu1 %v177_v27 }
  0xec   :  { %520 = vmatmul.mubr.bf16.vlgmr.msra.gmra.mxu1 %v178_v28 }
 0x1ac   :  { %v521_v32 = vpop.f32.mrf.mxu1 }
 0x1ad   :  { %v294_v39 = vmax.f32 %v521_v32, 0.0 }
 0x1ae   :  { %v277_v33 = vpop.f32.mrf.mxu1 }
 0x1af   :  { %v292_v37 = vmax.f32 %v277_v33, 0.0 }
 0x1b0   :  { %v522_v34 = vpop.f32.mrf.mxu1 }
 0x1b1   :  { %v295_v35 = vmax.f32 %v522_v34, 0.0 }
 0x1b2   :  { %v280_v36 = vpop.f32.mrf.mxu1 }
 0x1b3   :  { %v293_v38 = vmax.f32 %v280_v36, 0.0  ;;  %v297_v41 = vpack.c.bf16 %v295_v35, %v294_v39 }
 0x1b5   :  { %v296_v40 = vpack.c.bf16 %v293_v38, %v292_v37 }
 0x1b7   :  { %539 = vmatprep.mubr.bf16.mxu0 %v296_v40 }
 0x1b8   :  { %540 = vmatmul.mubr.bf16.vlgmr.msra.gmra.mxu0 %v297_v41 }
 0x278   :  { %v541_v43 = vpop.f32.mrf.mxu0 }
 0x279   :  { %v412_v44 = vadd.f32 %v541_v43, %v444_v42 }
 0x27a   :  { %v403_v45 = vpop.f32.mrf.mxu0 }
 0x27b   :  { %420 = vst [vmem:[%s697_s5 + $0x10] sm:$0xff] %v412_v44  ;;  %v404_v46 = vadd.f32 %v444_v42, %v403_v45 }
 0x27c   :  { %v542_v47 = vpop.f32.mrf.mxu0 }
 0x27d   :  { %418 = vst [vmem:[%s697_s5] sm:$0xff] %v404_v46  ;;  %v415_v48 = vadd.f32 %v542_v47, %v444_v42 }
 0x27e   :  { %v406_v49 = vpop.f32.mrf.mxu0 }
 0x27f   :  { %421 = vst [vmem:[%s697_s5 + $0x18] sm:$0xff] %v415_v48  ;;  %v407_v50 = vadd.f32 %v444_v42, %v406_v49 }
 0x281   :  { %419 = vst [vmem:[%s697_s5 + $0x8] sm:$0xff] %v407_v50 }

</bundles_post_ra>
